<compile_context>
chip_gen: v7x
topology: tpu7x:2x2x1
jax: 0.10.0
libtpu: 0.0.40
codegen_flags: <defaults>
</compile_context>

<pallas_src>
import functools

import jax
import jax.numpy as jnp
from jax.experimental import pallas as pl
from jax.experimental.pallas import tpu as pltpu

LRELU_ALPHA = 0.1
BN_EPS = 1e-5


def _lrelu(y):
    return jnp.where(y >= 0, y, LRELU_ALPHA * y)


def _halo_pad(W):
    # >= W+1 halo rows on each side of the flattened (n*H*W) row axis, rounded up to the
    # f32 sublane size (8) so the main activation store stays aligned (unmasked).
    return ((W + 1 + 7) // 8) * 8


def _tap_masks(rows, H, W):
    """Hoisted 3x3 boundary masks: one iota + 4 base masks, AND-combined per tap."""
    r = jax.lax.broadcasted_iota(jnp.int32, (rows, 1), 0)
    if (W & (W - 1)) == 0 and (H & (H - 1)) == 0:
        # Power-of-two spatial dims: replace // and % with shifts / ands.
        j = jnp.bitwise_and(r, W - 1)
        i = jnp.bitwise_and(jnp.right_shift(r, W.bit_length() - 1), H - 1)
    else:
        j = r % W
        i = (r // W) % H
    row_ok = {-1: i >= 1, 0: None, 1: i < H - 1}
    col_ok = {-1: j >= 1, 0: None, 1: j < W - 1}
    masks = {}
    for oi in (-1, 0, 1):
        for oj in (-1, 0, 1):
            mi, mj = row_ok[oi], col_ok[oj]
            if mi is None:
                masks[(oi, oj)] = mj
            elif mj is None:
                masks[(oi, oj)] = mi
            else:
                masks[(oi, oj)] = jnp.logical_and(mi, mj)
    return masks


def _conv3x3_tapsum(a_ref, w_ref, masks, rows, W, pad):
    """3x3 / stride-1 / pad-1 conv as 9 tap matmuls accumulated in f32.

    a_ref: VMEM (rows + 2*pad, C) f32 staging; valid activations at rows [pad, pad+rows)
           in (n, i, j) row-major order; halo rows are zeroed at kernel entry.
    w_ref: (9, C, Cout) bf16 weights, leading index = kh*3 + kw.
    masks: {(oi, oj): (rows, 1) bool or None} hoisted validity masks.
    Returns (rows, Cout) float32.
    """
    acc = None
    for kh in range(3):
        for kw in range(3):
            oi, oj = kh - 1, kw - 1
            start = pad + oi * W + oj
            slab = a_ref[start:start + rows, :]
            m = masks[(oi, oj)]
            if m is not None:
                # Select (not multiply): wrap/halo rows may hold unrelated data, but the
                # halo is also zeroed at kernel entry as a belt-and-suspenders guard.
                slab = jnp.where(m, slab, jnp.zeros_like(slab))
            part = jnp.dot(slab.astype(jnp.bfloat16), w_ref[kh * 3 + kw],
                           preferred_element_type=jnp.float32)
            acc = part if acc is None else acc + part
    return acc


def _make_stage_a_kernel(tile_n, H, W, Cin, Cout, c1_block):
    rows = tile_n * H * W
    pad = _halo_pad(W)

    def kernel(x_ref, s1_ref, t1_ref, w1_ref, c1_ref, sum_ref, sq_ref, abuf):
        # Zero the halo rows (tiny; keeps every grid step / megacore shard safe).
        abuf[0:pad, :] = jnp.zeros((pad, Cin), jnp.float32)
        abuf[pad + rows:pad + rows + pad, :] = jnp.zeros((pad, Cin), jnp.float32)

        # BN1 (precomputed per-channel scale/shift) + LeakyReLU, staged for conv1.
        x2d = x_ref[...].astype(jnp.float32).reshape(rows, Cin)
        abuf[pad:pad + rows, :] = _lrelu(x2d * s1_ref[...] + t1_ref[...])

        c1 = _conv3x3_tapsum(abuf, w1_ref, _tap_masks(rows, H, W), rows, W, pad)

        # Per-tile BN2 partial statistics from the f32 accumulator (before bf16 cast).
        sum_ref[...] = jnp.sum(c1, axis=0, keepdims=True).reshape(1, 1, Cout)
        sq_ref[...] = jnp.sum(c1 * c1, axis=0, keepdims=True).reshape(1, 1, Cout)

        # c1 round-trips HBM in bf16 (halves stage A -> stage B traffic).
        c1_ref[...] = c1.reshape(c1_block).astype(jnp.bfloat16)

    return kernel


def _make_stage_b_kernel(tile_n, H, W, Cin, Cout, activate_before_residual,
                         identity_shortcut, o_block):
    rows = tile_n * H * W
    pad = _halo_pad(W)

    def kernel(*refs):
        c1_ref, x_ref, s2_ref, t2_ref, w2_ref = refs[:5]
        idx = 5
        if activate_before_residual:
            s1_ref, t1_ref = refs[idx], refs[idx + 1]
            idx += 2
        if not identity_shortcut:
            wm_ref = refs[idx]
            idx += 1
        o_ref, abuf = refs[idx], refs[idx + 1]

        abuf[0:pad, :] = jnp.zeros((pad, Cout), jnp.float32)
        abuf[pad + rows:pad + rows + pad, :] = jnp.zeros((pad, Cout), jnp.float32)

        # BN2 + LeakyReLU on the bf16 c1 (math in f32), staged for conv2.
        c1 = c1_ref[...].astype(jnp.float32).reshape(rows, Cout)
        abuf[pad:pad + rows, :] = _lrelu(c1 * s2_ref[...] + t2_ref[...])

        c2 = _conv3x3_tapsum(abuf, w2_ref, _tap_masks(rows, H, W), rows, W, pad)

        # Shortcut path: trace-time branches (identity vs 1x1 conv, pre/post activation).
        x2d = x_ref[...].astype(jnp.float32).reshape(rows, Cin)
        if activate_before_residual:
            res_in = _lrelu(x2d * s1_ref[...] + t1_ref[...])
        else:
            res_in = x2d
        if identity_shortcut:
            res = res_in                       # no matmul, no wm DMA
        else:
            res = jnp.dot(res_in.astype(jnp.bfloat16), wm_ref[...],
                          preferred_element_type=jnp.float32)

        o_ref[...] = (res + c2).reshape(o_block).astype(o_ref.dtype)

    return kernel


def _pick_tiling(N, H, W, Cin, Cout):
    """Generation-aware batch-tile / VMEM-limit selection.

    v5e/v6e: 128 MiB VMEM -> bigger tiles + limit up to ~96 MiB.
    v7x:     64 MiB VMEM + 2 TensorCores -> ~40% budget, 32-48 MiB limit, >= 2 grid steps.
    """
    try:
        vmem_cap = int(getattr(pltpu.get_tpu_info(), "vmem_capacity_bytes", 0)) or (64 << 20)
    except Exception:
        vmem_cap = 64 << 20                      # conservative (v7x-sized) fallback

    pad = _halo_pad(W)

    def step_bytes(tile_n):
        rows = tile_n * H * W
        b = 2 * rows * Cin * 4                        # x tile, double-buffered f32
        b += 2 * rows * Cout * 2                      # c1 tile (bf16)
        b += 2 * rows * Cout * 4                      # out tile f32
        b += (rows + 2 * pad) * max(Cin, Cout) * 4    # activation staging scratch
        b += 2 * 9 * max(Cin, Cout) * Cout * 2        # conv weights (bf16, double-buffered)
        b += 2 * rows * Cout * 4                      # conv accumulator / residual temps
        return b

    budget = int(vmem_cap * 0.4)                 # headroom for Mosaic internals
    tile_n = 1
    for t in range(1, N + 1):
        if N % t:
            continue
        if N >= 2 and N // t < 2:
            continue                             # keep >= 2 grid steps for v7x's 2 TCs
        if t * H * W > 4096:
            break                                # step-overhead amortization saturates
        if step_bytes(t) <= budget:
            tile_n = t
    vmem_limit = int(min(vmem_cap * 3 // 4, max(32 << 20, 2 * step_bytes(tile_n))))
    return tile_n, vmem_limit


@functools.partial(
    jax.jit,
    static_argnames=("stride", "activate_before_residual", "tile_n",
                     "vmem_limit_bytes", "lane_dense"))
def _forward_impl(x, params, *, stride, activate_before_residual, tile_n,
                  vmem_limit_bytes, lane_dense):
    """x: (N, H, W, Cin) float32 (NHWC)."""
    # TODO(synk): stride > 1 (strided 3x3 conv + strided 1x1 mapping) not implemented.
    assert stride == 1, "only stride=1 is implemented in the Pallas kernels"
    N, H, W, Cin = x.shape
    Cout = params["w1"].shape[-1]
    identity_shortcut = (Cin == Cout)
    assert N % tile_n == 0
    num_tiles = N // tile_n
    rows = tile_n * H * W
    pad = _halo_pad(W)
    f32 = jnp.float32

    g1 = params["g1"].reshape(-1).astype(f32)
    b1 = params["b1"].reshape(-1).astype(f32)
    g2 = params["g2"].reshape(-1).astype(f32)
    b2 = params["b2"].reshape(-1).astype(f32)

    # BN1 training-mode batch stats (biased variance); sum and sum-of-squares fuse into a
    # single XLA read of x, folded into one per-channel scale/shift.
    # TODO(synk): fold this read into a stage-A prologue reduction kernel (low priority).
    xf = x.astype(f32)
    mean1 = jnp.mean(xf, axis=(0, 1, 2))
    var1 = jnp.maximum(jnp.mean(jnp.square(xf), axis=(0, 1, 2)) - jnp.square(mean1), 0.0)
    rstd1 = jax.lax.rsqrt(var1 + BN_EPS)
    scale1 = (g1 * rstd1).reshape(1, Cin)
    shift1 = (b1 - mean1 * g1 * rstd1).reshape(1, Cin)

    # Conv weights stay (9, C, Cout); per-tap slices are read by leading index in-kernel.
    w1r = params["w1"].astype(jnp.bfloat16)
    w2r = params["w2"].astype(jnp.bfloat16)

    # HBM layouts.  lane_dense flattens (H, W, C) into the lane axis so output stores are
    # wide unmasked vst; needs Mosaic lane-folding reshapes (probed in the wrapper).
    if lane_dense:
        x_io = x.reshape(N, H * W * Cin)         # free: memory order unchanged
        x_block = (tile_n, H * W * Cin)
        c1_block = (tile_n, H * W * Cout)
        o_block = (tile_n, H * W * Cout)
        c1_shape, o_shape = (N, H * W * Cout), (N, H * W * Cout)
        tile_idx = lambda n: (n, 0)
    else:
        x_io = x
        x_block = (tile_n, H, W, Cin)
        c1_block = (tile_n, H, W, Cout)
        o_block = (tile_n, H, W, Cout)
        c1_shape, o_shape = (N, H, W, Cout), (N, H, W, Cout)
        tile_idx = lambda n: (n, 0, 0, 0)

    x_spec = pl.BlockSpec(x_block, tile_idx)
    c1_spec = pl.BlockSpec(c1_block, tile_idx)
    o_spec = pl.BlockSpec(o_block, tile_idx)
    chan = lambda c: pl.BlockSpec((1, c), lambda n: (0, 0))
    stat_spec = pl.BlockSpec((1, 1, Cout), lambda n: (n, 0, 0))

    cparams = pltpu.CompilerParams(
        dimension_semantics=("parallel",),       # megacore-shard batch tiles on v7x
        vmem_limit_bytes=vmem_limit_bytes)
    # TODO(synk): on v7x, single-buffer the constant-index weight/scale specs
    # (pipeline_mode=pl.Buffered(1)) once that becomes load-bearing for VMEM.

    # ---- Stage A: lrelu(bn1(x)) -> conv1, plus per-tile BN2 partial sums. ----
    c1, psum, psq = pl.pallas_call(
        _make_stage_a_kernel(tile_n, H, W, Cin, Cout, c1_block),
        grid=(num_tiles,),
        in_specs=[x_spec, chan(Cin), chan(Cin),
                  pl.BlockSpec((9, Cin, Cout), lambda n: (0, 0, 0))],
        out_specs=[c1_spec, stat_spec, stat_spec],
        out_shape=[jax.ShapeDtypeStruct(c1_shape, jnp.bfloat16),
                   jax.ShapeDtypeStruct((num_tiles, 1, Cout), f32),
                   jax.ShapeDtypeStruct((num_tiles, 1, Cout), f32)],
        scratch_shapes=[pltpu.VMEM((rows + 2 * pad, Cin), f32)],    # conv1 staging (+halo)
        compiler_params=cparams,
    )(x_io, scale1, shift1, w1r)

    # ---- BN2 stats from per-tile partial sums (tiny plain-JAX finalize). ----
    count = jnp.asarray(N * H * W, f32)
    sum2 = jnp.sum(psum[:, 0, :], axis=0)
    sq2 = jnp.sum(psq[:, 0, :], axis=0)
    mean2 = sum2 / count
    var2 = jnp.maximum(sq2 / count - jnp.square(mean2), 0.0)
    rstd2 = jax.lax.rsqrt(var2 + BN_EPS)
    scale2 = (g2 * rstd2).reshape(1, Cout)
    shift2 = (b2 - mean2 * g2 * rstd2).reshape(1, Cout)

    # ---- Stage B: lrelu(bn2(c1)) -> conv2, shortcut, residual add. ----
    inputs = [c1, x_io, scale2, shift2, w2r]
    in_specs = [c1_spec, x_spec, chan(Cout), chan(Cout),
                pl.BlockSpec((9, Cout, Cout), lambda n: (0, 0, 0))]
    if activate_before_residual:
        inputs += [scale1, shift1]
        in_specs += [chan(Cin), chan(Cin)]
    if not identity_shortcut:
        inputs.append(params["wm"].astype(jnp.bfloat16))
        in_specs.append(pl.BlockSpec((Cin, Cout), lambda n: (0, 0)))

    out = pl.pallas_call(
        _make_stage_b_kernel(tile_n, H, W, Cin, Cout, activate_before_residual,
                             identity_shortcut, o_block),
        grid=(num_tiles,),
        in_specs=in_specs,
        out_specs=o_spec,
        out_shape=jax.ShapeDtypeStruct(o_shape, f32),
        scratch_shapes=[pltpu.VMEM((rows + 2 * pad, Cout), f32)],   # conv2 staging (+halo)
        compiler_params=cparams,
    )(*inputs)

    if lane_dense:
        out = out.reshape(N, H, W, Cout)         # free: memory order unchanged
    return out


_LANE_DENSE_OK = None  # per-process feature-probe cache


def residual_block_forward(x, params, *, stride=1, activate_before_residual=False):
    """ResidualBlock forward.  x: (N, H, W, Cin) float32 NHWC."""
    N, H, W, Cin = x.shape
    Cout = params["w1"].shape[-1]
    tile_n, vmem_limit = _pick_tiling(N, H, W, Cin, Cout)
    static = dict(stride=stride, activate_before_residual=activate_before_residual,
                  tile_n=tile_n, vmem_limit_bytes=vmem_limit)

    global _LANE_DENSE_OK
    if _LANE_DENSE_OK is None:
        # Feature probe: the lane-dense layout needs Mosaic support for lane-folding
        # reshapes ((rows, C) <-> (tile_n, H*W*C)).  AOT-compile it once; fall back to
        # the NHWC-tiled layout (known-good on all generations) if it does not lower.
        try:
            _forward_impl.lower(x, params, lane_dense=True, **static).compile()
            _LANE_DENSE_OK = True
        except Exception:
            _LANE_DENSE_OK = False

    return _forward_impl(x, params, lane_dense=_LANE_DENSE_OK, **static)


def residual_block_reference(x, params, *, activate_before_residual=False):
    """Pure-JAX reference (same NHWC semantics, HIGHEST precision) for correctness."""
    def bn_lrelu(h, g, b):
        mean = jnp.mean(h, axis=(0, 1, 2), keepdims=True)
        var = jnp.mean(jnp.square(h - mean), axis=(0, 1, 2), keepdims=True)
        y = (h - mean) * jax.lax.rsqrt(var + BN_EPS) * g + b
        return jnp.where(y >= 0, y, LRELU_ALPHA * y)

    def conv3x3(h, w9):
        w = w9.reshape(3, 3, w9.shape[1], w9.shape[2])  # HWIO
        return jax.lax.conv_general_dilated(
            h, w, window_strides=(1, 1), padding=((1, 1), (1, 1)),
            dimension_numbers=("NHWC", "HWIO", "NHWC"),
            precision=jax.lax.Precision.HIGHEST)

    a1 = bn_lrelu(x, params["g1"], params["b1"])
    res_in = a1 if activate_before_residual else x
    c1 = conv3x3(a1, params["w1"])
    a2 = bn_lrelu(c1, params["g2"], params["b2"])
    c2 = conv3x3(a2, params["w2"])
    if x.shape[-1] != params["w1"].shape[-1]:
        res = jnp.einsum("nhwc,co->nhwo", res_in, params["wm"],
                         precision=jax.lax.Precision.HIGHEST)
    else:
        res = res_in
    return res + c2


if __name__ == "__main__":
    # Config implied by the module: in_channels=4, out_channels=8, stride=1,
    # activate_before_residual=False.  NHWC input (2, 8, 8, 4) == NCHW (2, 4, 8, 8).
    N, H, W, Cin, Cout = 2, 8, 8, 4, 8
    key = jax.random.PRNGKey(0)
    ks = jax.random.split(key, 8)
    x = jax.random.normal(ks[0], (N, H, W, Cin), dtype=jnp.float32)
    params = {
        "g1": 1.0 + 0.1 * jax.random.normal(ks[1], (1, Cin), dtype=jnp.float32),
        "b1": 0.1 * jax.random.normal(ks[2], (1, Cin), dtype=jnp.float32),
        "w1": 0.1 * jax.random.normal(ks[3], (9, Cin, Cout), dtype=jnp.float32),
        "g2": 1.0 + 0.1 * jax.random.normal(ks[4], (1, Cout), dtype=jnp.float32),
        "b2": 0.1 * jax.random.normal(ks[5], (1, Cout), dtype=jnp.float32),
        "w2": 0.1 * jax.random.normal(ks[6], (9, Cout, Cout), dtype=jnp.float32),
        "wm": 0.1 * jax.random.normal(ks[7], (Cin, Cout), dtype=jnp.float32),
    }

    out = residual_block_forward(x, params, stride=1, activate_before_residual=False)
    out = jax.block_until_ready(out)

    ref = residual_block_reference(x, params, activate_before_residual=False)
    assert out.shape == (N, H, W, Cout)
    max_err = float(jnp.max(jnp.abs(out - ref)))
    # Kernel uses bf16 MXU inputs and a bf16 c1 HBM round trip (f32 accumulation);
    # the reference is f32 HIGHEST.
    assert jnp.allclose(out, ref, rtol=5e-2, atol=5e-2), f"max abs err = {max_err}"

    print("KERNEL_OK")
</pallas_src>

<mosaic_0001>
module attributes {stable_mosaic.version = 11 : i64} {
  func.func @kernel(%arg0: i32, %arg1: memref<1x8x8x4xf32, #tpu.memory_space<vmem>>, %arg2: memref<1x4xf32, #tpu.memory_space<vmem>>, %arg3: memref<1x4xf32, #tpu.memory_space<vmem>>, %arg4: memref<9x4x8xbf16, #tpu.memory_space<vmem>>, %arg5: memref<1x8x8x8xbf16, #tpu.memory_space<vmem>>, %arg6: memref<1x1x8xf32, #tpu.memory_space<vmem>>, %arg7: memref<1x1x8xf32, #tpu.memory_space<vmem>>, %arg8: memref<96x4xf32, #tpu.memory_space<vmem>>) attributes {dimension_semantics = [#tpu.dimension_semantics<parallel>], iteration_bounds = array<i64: 2>, scalar_prefetch = 0 : i64, scratch_operands = 1 : i64, tpu.core_type = #tpu.core_type<tc>, window_params = [{transform_indices = @transform_0, window_bounds = array<i64: 1, 8, 8, 4>}, {pipeline_mode = #tpu.pipeline_mode<synchronous>, transform_indices = @transform_1, window_bounds = array<i64: 1, 4>}, {pipeline_mode = #tpu.pipeline_mode<synchronous>, transform_indices = @transform_2, window_bounds = array<i64: 1, 4>}, {pipeline_mode = #tpu.pipeline_mode<synchronous>, transform_indices = @transform_3, window_bounds = array<i64: 9, 4, 8>}, {transform_indices = @transform_4, window_bounds = array<i64: 1, 8, 8, 8>}, {transform_indices = @transform_5, window_bounds = array<i64: 1, 1, 8>}, {transform_indices = @transform_6, window_bounds = array<i64: 1, 1, 8>}]} {
    %cst = arith.constant 0.000000e+00 : f32
    %0 = vector.broadcast %cst : f32 to vector<16x4xf32>
    %c0 = arith.constant 0 : index
    %c0_0 = arith.constant 0 : index
    %1 = vector.load %arg8[%c0, %c0_0] : memref<96x4xf32, #tpu.memory_space<vmem>>, vector<16x4xf32>
    tpu.vector_store %arg8[%c0, %c0_0], %0 {strides = array<i32>} : memref<96x4xf32, #tpu.memory_space<vmem>>, vector<16x4xf32>,
    %cst_1 = arith.constant 0.000000e+00 : f32
    %2 = vector.broadcast %cst_1 : f32 to vector<16x4xf32>
    %c80 = arith.constant 80 : index
    %c0_2 = arith.constant 0 : index
    %3 = vector.load %arg8[%c80, %c0_2] : memref<96x4xf32, #tpu.memory_space<vmem>>, vector<16x4xf32>
    tpu.vector_store %arg8[%c80, %c0_2], %2 {strides = array<i32>} : memref<96x4xf32, #tpu.memory_space<vmem>>, vector<16x4xf32>,
    %c0_3 = arith.constant 0 : index
    %c0_4 = arith.constant 0 : index
    %c0_5 = arith.constant 0 : index
    %c0_6 = arith.constant 0 : index
    %4 = vector.load %arg1[%c0_3, %c0_4, %c0_5, %c0_6] : memref<1x8x8x4xf32, #tpu.memory_space<vmem>>, vector<1x8x8x4xf32>
    %5 = vector.shape_cast %4 : vector<1x8x8x4xf32> to vector<64x4xf32>
    %c0_7 = arith.constant 0 : index
    %c0_8 = arith.constant 0 : index
    %6 = vector.load %arg2[%c0_7, %c0_8] : memref<1x4xf32, #tpu.memory_space<vmem>>, vector<1x4xf32>
    %7 = vector.broadcast %6 : vector<1x4xf32> to vector<64x4xf32>
    %8 = arith.mulf %5, %7 : vector<64x4xf32>
    %c0_9 = arith.constant 0 : index
    %c0_10 = arith.constant 0 : index
    %9 = vector.load %arg3[%c0_9, %c0_10] : memref<1x4xf32, #tpu.memory_space<vmem>>, vector<1x4xf32>
    %10 = vector.broadcast %9 : vector<1x4xf32> to vector<64x4xf32>
    %11 = arith.addf %8, %10 : vector<64x4xf32>
    %cst_11 = arith.constant 0.000000e+00 : f32
    %12 = vector.broadcast %cst_11 : f32 to vector<64x4xf32>
    %13 = arith.cmpf oge, %11, %12 : vector<64x4xf32>
    %cst_12 = arith.constant 1.000000e-01 : f32
    %14 = vector.broadcast %cst_12 : f32 to vector<64x4xf32>
    %15 = arith.mulf %14, %11 : vector<64x4xf32>
    %16 = arith.select %13, %11, %15 : vector<64x4xi1>, vector<64x4xf32>
    %c16 = arith.constant 16 : index
    %c0_13 = arith.constant 0 : index
    %17 = vector.load %arg8[%c16, %c0_13] : memref<96x4xf32, #tpu.memory_space<vmem>>, vector<64x4xf32>
    tpu.vector_store %arg8[%c16, %c0_13], %16 {strides = array<i32>} : memref<96x4xf32, #tpu.memory_space<vmem>>, vector<64x4xf32>,
    %18 = tpu.iota {dimensions = array<i32: 0>} : vector<64x1xi32>
    %c7_i32 = arith.constant 7 : i32
    %19 = vector.broadcast %c7_i32 : i32 to vector<64x1xi32>
    %20 = arith.andi %18, %19 : vector<64x1xi32>
    %c3_i32 = arith.constant 3 : i32
    %21 = vector.broadcast %c3_i32 : i32 to vector<64x1xi32>
    %22 = arith.shrsi %18, %21 : vector<64x1xi32>
    %c7_i32_14 = arith.constant 7 : i32
    %23 = vector.broadcast %c7_i32_14 : i32 to vector<64x1xi32>
    %24 = arith.andi %22, %23 : vector<64x1xi32>
    %c1_i32 = arith.constant 1 : i32
    %25 = vector.broadcast %c1_i32 : i32 to vector<64x1xi32>
    %26 = arith.cmpi sge, %24, %25 : vector<64x1xi32>
    %c7_i32_15 = arith.constant 7 : i32
    %27 = vector.broadcast %c7_i32_15 : i32 to vector<64x1xi32>
    %28 = arith.cmpi slt, %24, %27 : vector<64x1xi32>
    %c1_i32_16 = arith.constant 1 : i32
    %29 = vector.broadcast %c1_i32_16 : i32 to vector<64x1xi32>
    %30 = arith.cmpi sge, %20, %29 : vector<64x1xi32>
    %c7_i32_17 = arith.constant 7 : i32
    %31 = vector.broadcast %c7_i32_17 : i32 to vector<64x1xi32>
    %32 = arith.cmpi slt, %20, %31 : vector<64x1xi32>
    %33 = arith.andi %26, %30 : vector<64x1xi1>
    %34 = arith.andi %26, %32 : vector<64x1xi1>
    %35 = arith.andi %28, %30 : vector<64x1xi1>
    %36 = arith.andi %28, %32 : vector<64x1xi1>
    %c7 = arith.constant 7 : index
    %c0_18 = arith.constant 0 : index
    %37 = vector.load %arg8[%c7, %c0_18] : memref<96x4xf32, #tpu.memory_space<vmem>>, vector<64x4xf32>
    %cst_19 = arith.constant 0.000000e+00 : f32
    %38 = vector.broadcast %cst_19 : f32 to vector<64x4xf32>
    %39 = vector.shape_cast %33 : vector<64x1xi1> to vector<64x1xi1>
    %40 = vector.broadcast %39 : vector<64x1xi1> to vector<64x4xi1>
    %41 = arith.select %40, %37, %38 : vector<64x4xi1>, vector<64x4xf32>
    %42 = arith.truncf %41 : vector<64x4xf32> to vector<64x4xbf16>
    %c0_20 = arith.constant 0 : index
    %c0_21 = arith.constant 0 : index
    %c0_22 = arith.constant 0 : index
    %43 = vector.load %arg4[%c0_20, %c0_21, %c0_22] : memref<9x4x8xbf16, #tpu.memory_space<vmem>>, vector<1x4x8xbf16>
    %44 = vector.shape_cast %43 : vector<1x4x8xbf16> to vector<4x8xbf16>
    %cst_23 = arith.constant dense<0.000000e+00> : vector<64x8xf32>
    %45 = tpu.matmul %42, %44, %cst_23 {dimension_numbers = #tpu.dot_dimension_numbers<[1], [0], [0], [1], [0, 0, 1, 1], [], []>} : vector<64x4xbf16>, vector<4x8xbf16>, vector<64x8xf32> -> vector<64x8xf32>
    %c8 = arith.constant 8 : index
    %c0_24 = arith.constant 0 : index
    %46 = vector.load %arg8[%c8, %c0_24] : memref<96x4xf32, #tpu.memory_space<vmem>>, vector<64x4xf32>
    %cst_25 = arith.constant 0.000000e+00 : f32
    %47 = vector.broadcast %cst_25 : f32 to vector<64x4xf32>
    %48 = vector.shape_cast %26 : vector<64x1xi1> to vector<64x1xi1>
    %49 = vector.broadcast %48 : vector<64x1xi1> to vector<64x4xi1>
    %50 = arith.select %49, %46, %47 : vector<64x4xi1>, vector<64x4xf32>
    %51 = arith.truncf %50 : vector<64x4xf32> to vector<64x4xbf16>
    %c1 = arith.constant 1 : index
    %c0_26 = arith.constant 0 : index
    %c0_27 = arith.constant 0 : index
    %52 = vector.load %arg4[%c1, %c0_26, %c0_27] : memref<9x4x8xbf16, #tpu.memory_space<vmem>>, vector<1x4x8xbf16>
    %53 = vector.shape_cast %52 : vector<1x4x8xbf16> to vector<4x8xbf16>
    %cst_28 = arith.constant dense<0.000000e+00> : vector<64x8xf32>
    %54 = tpu.matmul %51, %53, %cst_28 {dimension_numbers = #tpu.dot_dimension_numbers<[1], [0], [0], [1], [0, 0, 1, 1], [], []>} : vector<64x4xbf16>, vector<4x8xbf16>, vector<64x8xf32> -> vector<64x8xf32>
    %55 = arith.addf %45, %54 : vector<64x8xf32>
    %c9 = arith.constant 9 : index
    %c0_29 = arith.constant 0 : index
    %56 = vector.load %arg8[%c9, %c0_29] : memref<96x4xf32, #tpu.memory_space<vmem>>, vector<64x4xf32>
    %cst_30 = arith.constant 0.000000e+00 : f32
    %57 = vector.broadcast %cst_30 : f32 to vector<64x4xf32>
    %58 = vector.shape_cast %34 : vector<64x1xi1> to vector<64x1xi1>
    %59 = vector.broadcast %58 : vector<64x1xi1> to vector<64x4xi1>
    %60 = arith.select %59, %56, %57 : vector<64x4xi1>, vector<64x4xf32>
    %61 = arith.truncf %60 : vector<64x4xf32> to vector<64x4xbf16>
    %c2 = arith.constant 2 : index
    %c0_31 = arith.constant 0 : index
    %c0_32 = arith.constant 0 : index
    %62 = vector.load %arg4[%c2, %c0_31, %c0_32] : memref<9x4x8xbf16, #tpu.memory_space<vmem>>, vector<1x4x8xbf16>
    %63 = vector.shape_cast %62 : vector<1x4x8xbf16> to vector<4x8xbf16>
    %cst_33 = arith.constant dense<0.000000e+00> : vector<64x8xf32>
    %64 = tpu.matmul %61, %63, %cst_33 {dimension_numbers = #tpu.dot_dimension_numbers<[1], [0], [0], [1], [0, 0, 1, 1], [], []>} : vector<64x4xbf16>, vector<4x8xbf16>, vector<64x8xf32> -> vector<64x8xf32>
    %65 = arith.addf %55, %64 : vector<64x8xf32>
    %c15 = arith.constant 15 : index
    %c0_34 = arith.constant 0 : index
    %66 = vector.load %arg8[%c15, %c0_34] : memref<96x4xf32, #tpu.memory_space<vmem>>, vector<64x4xf32>
    %cst_35 = arith.constant 0.000000e+00 : f32
    %67 = vector.broadcast %cst_35 : f32 to vector<64x4xf32>
    %68 = vector.shape_cast %30 : vector<64x1xi1> to vector<64x1xi1>
    %69 = vector.broadcast %68 : vector<64x1xi1> to vector<64x4xi1>
    %70 = arith.select %69, %66, %67 : vector<64x4xi1>, vector<64x4xf32>
    %71 = arith.truncf %70 : vector<64x4xf32> to vector<64x4xbf16>
    %c3 = arith.constant 3 : index
    %c0_36 = arith.constant 0 : index
    %c0_37 = arith.constant 0 : index
    %72 = vector.load %arg4[%c3, %c0_36, %c0_37] : memref<9x4x8xbf16, #tpu.memory_space<vmem>>, vector<1x4x8xbf16>
    %73 = vector.shape_cast %72 : vector<1x4x8xbf16> to vector<4x8xbf16>
    %cst_38 = arith.constant dense<0.000000e+00> : vector<64x8xf32>
    %74 = tpu.matmul %71, %73, %cst_38 {dimension_numbers = #tpu.dot_dimension_numbers<[1], [0], [0], [1], [0, 0, 1, 1], [], []>} : vector<64x4xbf16>, vector<4x8xbf16>, vector<64x8xf32> -> vector<64x8xf32>
    %75 = arith.addf %65, %74 : vector<64x8xf32>
    %c16_39 = arith.constant 16 : index
    %c0_40 = arith.constant 0 : index
    %76 = vector.load %arg8[%c16_39, %c0_40] : memref<96x4xf32, #tpu.memory_space<vmem>>, vector<64x4xf32>
    %77 = arith.truncf %76 : vector<64x4xf32> to vector<64x4xbf16>
    %c4 = arith.constant 4 : index
    %c0_41 = arith.constant 0 : index
    %c0_42 = arith.constant 0 : index
    %78 = vector.load %arg4[%c4, %c0_41, %c0_42] : memref<9x4x8xbf16, #tpu.memory_space<vmem>>, vector<1x4x8xbf16>
    %79 = vector.shape_cast %78 : vector<1x4x8xbf16> to vector<4x8xbf16>
    %cst_43 = arith.constant dense<0.000000e+00> : vector<64x8xf32>
    %80 = tpu.matmul %77, %79, %cst_43 {dimension_numbers = #tpu.dot_dimension_numbers<[1], [0], [0], [1], [0, 0, 1, 1], [], []>} : vector<64x4xbf16>, vector<4x8xbf16>, vector<64x8xf32> -> vector<64x8xf32>
    %81 = arith.addf %75, %80 : vector<64x8xf32>
    %c17 = arith.constant 17 : index
    %c0_44 = arith.constant 0 : index
    %82 = vector.load %arg8[%c17, %c0_44] : memref<96x4xf32, #tpu.memory_space<vmem>>, vector<64x4xf32>
    %cst_45 = arith.constant 0.000000e+00 : f32
    %83 = vector.broadcast %cst_45 : f32 to vector<64x4xf32>
    %84 = vector.shape_cast %32 : vector<64x1xi1> to vector<64x1xi1>
    %85 = vector.broadcast %84 : vector<64x1xi1> to vector<64x4xi1>
    %86 = arith.select %85, %82, %83 : vector<64x4xi1>, vector<64x4xf32>
    %87 = arith.truncf %86 : vector<64x4xf32> to vector<64x4xbf16>
    %c5 = arith.constant 5 : index
    %c0_46 = arith.constant 0 : index
    %c0_47 = arith.constant 0 : index
    %88 = vector.load %arg4[%c5, %c0_46, %c0_47] : memref<9x4x8xbf16, #tpu.memory_space<vmem>>, vector<1x4x8xbf16>
    %89 = vector.shape_cast %88 : vector<1x4x8xbf16> to vector<4x8xbf16>
    %cst_48 = arith.constant dense<0.000000e+00> : vector<64x8xf32>
    %90 = tpu.matmul %87, %89, %cst_48 {dimension_numbers = #tpu.dot_dimension_numbers<[1], [0], [0], [1], [0, 0, 1, 1], [], []>} : vector<64x4xbf16>, vector<4x8xbf16>, vector<64x8xf32> -> vector<64x8xf32>
    %91 = arith.addf %81, %90 : vector<64x8xf32>
    %c23 = arith.constant 23 : index
    %c0_49 = arith.constant 0 : index
    %92 = vector.load %arg8[%c23, %c0_49] : memref<96x4xf32, #tpu.memory_space<vmem>>, vector<64x4xf32>
    %cst_50 = arith.constant 0.000000e+00 : f32
    %93 = vector.broadcast %cst_50 : f32 to vector<64x4xf32>
    %94 = vector.shape_cast %35 : vector<64x1xi1> to vector<64x1xi1>
    %95 = vector.broadcast %94 : vector<64x1xi1> to vector<64x4xi1>
    %96 = arith.select %95, %92, %93 : vector<64x4xi1>, vector<64x4xf32>
    %97 = arith.truncf %96 : vector<64x4xf32> to vector<64x4xbf16>
    %c6 = arith.constant 6 : index
    %c0_51 = arith.constant 0 : index
    %c0_52 = arith.constant 0 : index
    %98 = vector.load %arg4[%c6, %c0_51, %c0_52] : memref<9x4x8xbf16, #tpu.memory_space<vmem>>, vector<1x4x8xbf16>
    %99 = vector.shape_cast %98 : vector<1x4x8xbf16> to vector<4x8xbf16>
    %cst_53 = arith.constant dense<0.000000e+00> : vector<64x8xf32>
    %100 = tpu.matmul %97, %99, %cst_53 {dimension_numbers = #tpu.dot_dimension_numbers<[1], [0], [0], [1], [0, 0, 1, 1], [], []>} : vector<64x4xbf16>, vector<4x8xbf16>, vector<64x8xf32> -> vector<64x8xf32>
    %101 = arith.addf %91, %100 : vector<64x8xf32>
    %c24 = arith.constant 24 : index
    %c0_54 = arith.constant 0 : index
    %102 = vector.load %arg8[%c24, %c0_54] : memref<96x4xf32, #tpu.memory_space<vmem>>, vector<64x4xf32>
    %cst_55 = arith.constant 0.000000e+00 : f32
    %103 = vector.broadcast %cst_55 : f32 to vector<64x4xf32>
    %104 = vector.shape_cast %28 : vector<64x1xi1> to vector<64x1xi1>
    %105 = vector.broadcast %104 : vector<64x1xi1> to vector<64x4xi1>
    %106 = arith.select %105, %102, %103 : vector<64x4xi1>, vector<64x4xf32>
    %107 = arith.truncf %106 : vector<64x4xf32> to vector<64x4xbf16>
    %c7_56 = arith.constant 7 : index
    %c0_57 = arith.constant 0 : index
    %c0_58 = arith.constant 0 : index
    %108 = vector.load %arg4[%c7_56, %c0_57, %c0_58] : memref<9x4x8xbf16, #tpu.memory_space<vmem>>, vector<1x4x8xbf16>
    %109 = vector.shape_cast %108 : vector<1x4x8xbf16> to vector<4x8xbf16>
    %cst_59 = arith.constant dense<0.000000e+00> : vector<64x8xf32>
    %110 = tpu.matmul %107, %109, %cst_59 {dimension_numbers = #tpu.dot_dimension_numbers<[1], [0], [0], [1], [0, 0, 1, 1], [], []>} : vector<64x4xbf16>, vector<4x8xbf16>, vector<64x8xf32> -> vector<64x8xf32>
    %111 = arith.addf %101, %110 : vector<64x8xf32>
    %c25 = arith.constant 25 : index
    %c0_60 = arith.constant 0 : index
    %112 = vector.load %arg8[%c25, %c0_60] : memref<96x4xf32, #tpu.memory_space<vmem>>, vector<64x4xf32>
    %cst_61 = arith.constant 0.000000e+00 : f32
    %113 = vector.broadcast %cst_61 : f32 to vector<64x4xf32>
    %114 = vector.shape_cast %36 : vector<64x1xi1> to vector<64x1xi1>
    %115 = vector.broadcast %114 : vector<64x1xi1> to vector<64x4xi1>
    %116 = arith.select %115, %112, %113 : vector<64x4xi1>, vector<64x4xf32>
    %117 = arith.truncf %116 : vector<64x4xf32> to vector<64x4xbf16>
    %c8_62 = arith.constant 8 : index
    %c0_63 = arith.constant 0 : index
    %c0_64 = arith.constant 0 : index
    %118 = vector.load %arg4[%c8_62, %c0_63, %c0_64] : memref<9x4x8xbf16, #tpu.memory_space<vmem>>, vector<1x4x8xbf16>
    %119 = vector.shape_cast %118 : vector<1x4x8xbf16> to vector<4x8xbf16>
    %cst_65 = arith.constant dense<0.000000e+00> : vector<64x8xf32>
    %120 = tpu.matmul %117, %119, %cst_65 {dimension_numbers = #tpu.dot_dimension_numbers<[1], [0], [0], [1], [0, 0, 1, 1], [], []>} : vector<64x4xbf16>, vector<4x8xbf16>, vector<64x8xf32> -> vector<64x8xf32>
    %121 = arith.addf %111, %120 : vector<64x8xf32>
    %cst_66 = arith.constant dense<0.000000e+00> : vector<8xf32>
    %122 = vector.multi_reduction <add>, %121, %cst_66 [0] : vector<64x8xf32> to vector<8xf32>
    %123 = vector.shape_cast %122 : vector<8xf32> to vector<1x8xf32>
    %124 = vector.shape_cast %123 : vector<1x8xf32> to vector<1x1x8xf32>
    %c0_67 = arith.constant 0 : index
    %c0_68 = arith.constant 0 : index
    %c0_69 = arith.constant 0 : index
    %125 = vector.load %arg6[%c0_67, %c0_68, %c0_69] : memref<1x1x8xf32, #tpu.memory_space<vmem>>, vector<1x1x8xf32>
    tpu.vector_store %arg6[%c0_67, %c0_68, %c0_69], %124 {strides = array<i32>} : memref<1x1x8xf32, #tpu.memory_space<vmem>>, vector<1x1x8xf32>,
    %126 = arith.mulf %121, %121 : vector<64x8xf32>
    %cst_70 = arith.constant dense<0.000000e+00> : vector<8xf32>
    %127 = vector.multi_reduction <add>, %126, %cst_70 [0] : vector<64x8xf32> to vector<8xf32>
    %128 = vector.shape_cast %127 : vector<8xf32> to vector<1x8xf32>
    %129 = vector.shape_cast %128 : vector<1x8xf32> to vector<1x1x8xf32>
    %c0_71 = arith.constant 0 : index
    %c0_72 = arith.constant 0 : index
    %c0_73 = arith.constant 0 : index
    %130 = vector.load %arg7[%c0_71, %c0_72, %c0_73] : memref<1x1x8xf32, #tpu.memory_space<vmem>>, vector<1x1x8xf32>
    tpu.vector_store %arg7[%c0_71, %c0_72, %c0_73], %129 {strides = array<i32>} : memref<1x1x8xf32, #tpu.memory_space<vmem>>, vector<1x1x8xf32>,
    %131 = vector.shape_cast %121 : vector<64x8xf32> to vector<1x8x8x8xf32>
    %132 = arith.truncf %131 : vector<1x8x8x8xf32> to vector<1x8x8x8xbf16>
    %c0_74 = arith.constant 0 : index
    %c0_75 = arith.constant 0 : index
    %c0_76 = arith.constant 0 : index
    %c0_77 = arith.constant 0 : index
    %133 = vector.load %arg5[%c0_74, %c0_75, %c0_76, %c0_77] : memref<1x8x8x8xbf16, #tpu.memory_space<vmem>>, vector<1x8x8x8xbf16>
    tpu.vector_store %arg5[%c0_74, %c0_75, %c0_76, %c0_77], %132 {strides = array<i32>} : memref<1x8x8x8xbf16, #tpu.memory_space<vmem>>, vector<1x8x8x8xbf16>,
    return
  }
  func.func @transform_0(%arg0: i32) -> (i32, i32, i32, i32) {
    %c0_i32 = arith.constant 0 : i32
    %c0_i32_0 = arith.constant 0 : i32
    %c0_i32_1 = arith.constant 0 : i32
    %c0_i32_2 = arith.constant 0 : i32
    return %arg0, %c0_i32, %c0_i32_0, %c0_i32_1 : i32, i32, i32, i32
  }
  func.func @transform_1(%arg0: i32) -> (i32, i32) {
    %c0_i32 = arith.constant 0 : i32
    %c0_i32_0 = arith.constant 0 : i32
    %c0_i32_1 = arith.constant 0 : i32
    return %c0_i32, %c0_i32_0 : i32, i32
  }
  func.func @transform_2(%arg0: i32) -> (i32, i32) {
    %c0_i32 = arith.constant 0 : i32
    %c0_i32_0 = arith.constant 0 : i32
    %c0_i32_1 = arith.constant 0 : i32
    return %c0_i32, %c0_i32_0 : i32, i32
  }
  func.func @transform_3(%arg0: i32) -> (i32, i32, i32) {
    %c0_i32 = arith.constant 0 : i32
    %c0_i32_0 = arith.constant 0 : i32
    %c0_i32_1 = arith.constant 0 : i32
    %c0_i32_2 = arith.constant 0 : i32
    return %c0_i32, %c0_i32_0, %c0_i32_1 : i32, i32, i32
  }
  func.func @transform_4(%arg0: i32) -> (i32, i32, i32, i32) {
    %c0_i32 = arith.constant 0 : i32
    %c0_i32_0 = arith.constant 0 : i32
    %c0_i32_1 = arith.constant 0 : i32
    %c0_i32_2 = arith.constant 0 : i32
    return %arg0, %c0_i32, %c0_i32_0, %c0_i32_1 : i32, i32, i32, i32
  }
  func.func @transform_5(%arg0: i32) -> (i32, i32, i32) {
    %c0_i32 = arith.constant 0 : i32
    %c0_i32_0 = arith.constant 0 : i32
    %c0_i32_1 = arith.constant 0 : i32
    return %arg0, %c0_i32, %c0_i32_0 : i32, i32, i32
  }
  func.func @transform_6(%arg0: i32) -> (i32, i32, i32) {
    %c0_i32 = arith.constant 0 : i32
    %c0_i32_0 = arith.constant 0 : i32
    %c0_i32_1 = arith.constant 0 : i32
    return %arg0, %c0_i32, %c0_i32_0 : i32, i32, i32
  }
}

module attributes {stable_mosaic.version = 11 : i64} {
  func.func @kernel(%arg0: i32, %arg1: memref<1x8x8x8xbf16, #tpu.memory_space<vmem>>, %arg2: memref<1x8x8x4xf32, #tpu.memory_space<vmem>>, %arg3: memref<1x8xf32, #tpu.memory_space<vmem>>, %arg4: memref<1x8xf32, #tpu.memory_space<vmem>>, %arg5: memref<9x8x8xbf16, #tpu.memory_space<vmem>>, %arg6: memref<4x8xbf16, #tpu.memory_space<vmem>>, %arg7: memref<1x8x8x8xf32, #tpu.memory_space<vmem>>, %arg8: memref<96x8xf32, #tpu.memory_space<vmem>>) attributes {dimension_semantics = [#tpu.dimension_semantics<parallel>], iteration_bounds = array<i64: 2>, scalar_prefetch = 0 : i64, scratch_operands = 1 : i64, tpu.core_type = #tpu.core_type<tc>, window_params = [{transform_indices = @transform_0, window_bounds = array<i64: 1, 8, 8, 8>}, {transform_indices = @transform_1, window_bounds = array<i64: 1, 8, 8, 4>}, {pipeline_mode = #tpu.pipeline_mode<synchronous>, transform_indices = @transform_2, window_bounds = array<i64: 1, 8>}, {pipeline_mode = #tpu.pipeline_mode<synchronous>, transform_indices = @transform_3, window_bounds = array<i64: 1, 8>}, {pipeline_mode = #tpu.pipeline_mode<synchronous>, transform_indices = @transform_4, window_bounds = array<i64: 9, 8, 8>}, {pipeline_mode = #tpu.pipeline_mode<synchronous>, transform_indices = @transform_5, window_bounds = array<i64: 4, 8>}, {transform_indices = @transform_6, window_bounds = array<i64: 1, 8, 8, 8>}]} {
    %cst = arith.constant 0.000000e+00 : f32
    %0 = vector.broadcast %cst : f32 to vector<16x8xf32>
    %c0 = arith.constant 0 : index
    %c0_0 = arith.constant 0 : index
    %1 = vector.load %arg8[%c0, %c0_0] : memref<96x8xf32, #tpu.memory_space<vmem>>, vector<16x8xf32>
    tpu.vector_store %arg8[%c0, %c0_0], %0 {strides = array<i32>} : memref<96x8xf32, #tpu.memory_space<vmem>>, vector<16x8xf32>,
    %cst_1 = arith.constant 0.000000e+00 : f32
    %2 = vector.broadcast %cst_1 : f32 to vector<16x8xf32>
    %c80 = arith.constant 80 : index
    %c0_2 = arith.constant 0 : index
    %3 = vector.load %arg8[%c80, %c0_2] : memref<96x8xf32, #tpu.memory_space<vmem>>, vector<16x8xf32>
    tpu.vector_store %arg8[%c80, %c0_2], %2 {strides = array<i32>} : memref<96x8xf32, #tpu.memory_space<vmem>>, vector<16x8xf32>,
    %c0_3 = arith.constant 0 : index
    %c0_4 = arith.constant 0 : index
    %c0_5 = arith.constant 0 : index
    %c0_6 = arith.constant 0 : index
    %4 = vector.load %arg1[%c0_3, %c0_4, %c0_5, %c0_6] : memref<1x8x8x8xbf16, #tpu.memory_space<vmem>>, vector<1x8x8x8xbf16>
    %5 = arith.extf %4 : vector<1x8x8x8xbf16> to vector<1x8x8x8xf32>
    %6 = vector.shape_cast %5 : vector<1x8x8x8xf32> to vector<64x8xf32>
    %c0_7 = arith.constant 0 : index
    %c0_8 = arith.constant 0 : index
    %7 = vector.load %arg3[%c0_7, %c0_8] : memref<1x8xf32, #tpu.memory_space<vmem>>, vector<1x8xf32>
    %8 = vector.broadcast %7 : vector<1x8xf32> to vector<64x8xf32>
    %9 = arith.mulf %6, %8 : vector<64x8xf32>
    %c0_9 = arith.constant 0 : index
    %c0_10 = arith.constant 0 : index
    %10 = vector.load %arg4[%c0_9, %c0_10] : memref<1x8xf32, #tpu.memory_space<vmem>>, vector<1x8xf32>
    %11 = vector.broadcast %10 : vector<1x8xf32> to vector<64x8xf32>
    %12 = arith.addf %9, %11 : vector<64x8xf32>
    %cst_11 = arith.constant 0.000000e+00 : f32
    %13 = vector.broadcast %cst_11 : f32 to vector<64x8xf32>
    %14 = arith.cmpf oge, %12, %13 : vector<64x8xf32>
    %cst_12 = arith.constant 1.000000e-01 : f32
    %15 = vector.broadcast %cst_12 : f32 to vector<64x8xf32>
    %16 = arith.mulf %15, %12 : vector<64x8xf32>
    %17 = arith.select %14, %12, %16 : vector<64x8xi1>, vector<64x8xf32>
    %c16 = arith.constant 16 : index
    %c0_13 = arith.constant 0 : index
    %18 = vector.load %arg8[%c16, %c0_13] : memref<96x8xf32, #tpu.memory_space<vmem>>, vector<64x8xf32>
    tpu.vector_store %arg8[%c16, %c0_13], %17 {strides = array<i32>} : memref<96x8xf32, #tpu.memory_space<vmem>>, vector<64x8xf32>,
    %19 = tpu.iota {dimensions = array<i32: 0>} : vector<64x1xi32>
    %c7_i32 = arith.constant 7 : i32
    %20 = vector.broadcast %c7_i32 : i32 to vector<64x1xi32>
    %21 = arith.andi %19, %20 : vector<64x1xi32>
    %c3_i32 = arith.constant 3 : i32
    %22 = vector.broadcast %c3_i32 : i32 to vector<64x1xi32>
    %23 = arith.shrsi %19, %22 : vector<64x1xi32>
    %c7_i32_14 = arith.constant 7 : i32
    %24 = vector.broadcast %c7_i32_14 : i32 to vector<64x1xi32>
    %25 = arith.andi %23, %24 : vector<64x1xi32>
    %c1_i32 = arith.constant 1 : i32
    %26 = vector.broadcast %c1_i32 : i32 to vector<64x1xi32>
    %27 = arith.cmpi sge, %25, %26 : vector<64x1xi32>
    %c7_i32_15 = arith.constant 7 : i32
    %28 = vector.broadcast %c7_i32_15 : i32 to vector<64x1xi32>
    %29 = arith.cmpi slt, %25, %28 : vector<64x1xi32>
    %c1_i32_16 = arith.constant 1 : i32
    %30 = vector.broadcast %c1_i32_16 : i32 to vector<64x1xi32>
    %31 = arith.cmpi sge, %21, %30 : vector<64x1xi32>
    %c7_i32_17 = arith.constant 7 : i32
    %32 = vector.broadcast %c7_i32_17 : i32 to vector<64x1xi32>
    %33 = arith.cmpi slt, %21, %32 : vector<64x1xi32>
    %34 = arith.andi %27, %31 : vector<64x1xi1>
    %35 = arith.andi %27, %33 : vector<64x1xi1>
    %36 = arith.andi %29, %31 : vector<64x1xi1>
    %37 = arith.andi %29, %33 : vector<64x1xi1>
    %c7 = arith.constant 7 : index
    %c0_18 = arith.constant 0 : index
    %38 = vector.load %arg8[%c7, %c0_18] : memref<96x8xf32, #tpu.memory_space<vmem>>, vector<64x8xf32>
    %cst_19 = arith.constant 0.000000e+00 : f32
    %39 = vector.broadcast %cst_19 : f32 to vector<64x8xf32>
    %40 = vector.shape_cast %34 : vector<64x1xi1> to vector<64x1xi1>
    %41 = vector.broadcast %40 : vector<64x1xi1> to vector<64x8xi1>
    %42 = arith.select %41, %38, %39 : vector<64x8xi1>, vector<64x8xf32>
    %43 = arith.truncf %42 : vector<64x8xf32> to vector<64x8xbf16>
    %c0_20 = arith.constant 0 : index
    %c0_21 = arith.constant 0 : index
    %c0_22 = arith.constant 0 : index
    %44 = vector.load %arg5[%c0_20, %c0_21, %c0_22] : memref<9x8x8xbf16, #tpu.memory_space<vmem>>, vector<1x8x8xbf16>
    %45 = vector.shape_cast %44 : vector<1x8x8xbf16> to vector<8x8xbf16>
    %cst_23 = arith.constant dense<0.000000e+00> : vector<64x8xf32>
    %46 = tpu.matmul %43, %45, %cst_23 {dimension_numbers = #tpu.dot_dimension_numbers<[1], [0], [0], [1], [0, 0, 1, 1], [], []>} : vector<64x8xbf16>, vector<8x8xbf16>, vector<64x8xf32> -> vector<64x8xf32>
    %c8 = arith.constant 8 : index
    %c0_24 = arith.constant 0 : index
    %47 = vector.load %arg8[%c8, %c0_24] : memref<96x8xf32, #tpu.memory_space<vmem>>, vector<64x8xf32>
    %cst_25 = arith.constant 0.000000e+00 : f32
    %48 = vector.broadcast %cst_25 : f32 to vector<64x8xf32>
    %49 = vector.shape_cast %27 : vector<64x1xi1> to vector<64x1xi1>
    %50 = vector.broadcast %49 : vector<64x1xi1> to vector<64x8xi1>
    %51 = arith.select %50, %47, %48 : vector<64x8xi1>, vector<64x8xf32>
    %52 = arith.truncf %51 : vector<64x8xf32> to vector<64x8xbf16>
    %c1 = arith.constant 1 : index
    %c0_26 = arith.constant 0 : index
    %c0_27 = arith.constant 0 : index
    %53 = vector.load %arg5[%c1, %c0_26, %c0_27] : memref<9x8x8xbf16, #tpu.memory_space<vmem>>, vector<1x8x8xbf16>
    %54 = vector.shape_cast %53 : vector<1x8x8xbf16> to vector<8x8xbf16>
    %cst_28 = arith.constant dense<0.000000e+00> : vector<64x8xf32>
    %55 = tpu.matmul %52, %54, %cst_28 {dimension_numbers = #tpu.dot_dimension_numbers<[1], [0], [0], [1], [0, 0, 1, 1], [], []>} : vector<64x8xbf16>, vector<8x8xbf16>, vector<64x8xf32> -> vector<64x8xf32>
    %56 = arith.addf %46, %55 : vector<64x8xf32>
    %c9 = arith.constant 9 : index
    %c0_29 = arith.constant 0 : index
    %57 = vector.load %arg8[%c9, %c0_29] : memref<96x8xf32, #tpu.memory_space<vmem>>, vector<64x8xf32>
    %cst_30 = arith.constant 0.000000e+00 : f32
    %58 = vector.broadcast %cst_30 : f32 to vector<64x8xf32>
    %59 = vector.shape_cast %35 : vector<64x1xi1> to vector<64x1xi1>
    %60 = vector.broadcast %59 : vector<64x1xi1> to vector<64x8xi1>
    %61 = arith.select %60, %57, %58 : vector<64x8xi1>, vector<64x8xf32>
    %62 = arith.truncf %61 : vector<64x8xf32> to vector<64x8xbf16>
    %c2 = arith.constant 2 : index
    %c0_31 = arith.constant 0 : index
    %c0_32 = arith.constant 0 : index
    %63 = vector.load %arg5[%c2, %c0_31, %c0_32] : memref<9x8x8xbf16, #tpu.memory_space<vmem>>, vector<1x8x8xbf16>
    %64 = vector.shape_cast %63 : vector<1x8x8xbf16> to vector<8x8xbf16>
    %cst_33 = arith.constant dense<0.000000e+00> : vector<64x8xf32>
    %65 = tpu.matmul %62, %64, %cst_33 {dimension_numbers = #tpu.dot_dimension_numbers<[1], [0], [0], [1], [0, 0, 1, 1], [], []>} : vector<64x8xbf16>, vector<8x8xbf16>, vector<64x8xf32> -> vector<64x8xf32>
    %66 = arith.addf %56, %65 : vector<64x8xf32>
    %c15 = arith.constant 15 : index
    %c0_34 = arith.constant 0 : index
    %67 = vector.load %arg8[%c15, %c0_34] : memref<96x8xf32, #tpu.memory_space<vmem>>, vector<64x8xf32>
    %cst_35 = arith.constant 0.000000e+00 : f32
    %68 = vector.broadcast %cst_35 : f32 to vector<64x8xf32>
    %69 = vector.shape_cast %31 : vector<64x1xi1> to vector<64x1xi1>
    %70 = vector.broadcast %69 : vector<64x1xi1> to vector<64x8xi1>
    %71 = arith.select %70, %67, %68 : vector<64x8xi1>, vector<64x8xf32>
    %72 = arith.truncf %71 : vector<64x8xf32> to vector<64x8xbf16>
    %c3 = arith.constant 3 : index
    %c0_36 = arith.constant 0 : index
    %c0_37 = arith.constant 0 : index
    %73 = vector.load %arg5[%c3, %c0_36, %c0_37] : memref<9x8x8xbf16, #tpu.memory_space<vmem>>, vector<1x8x8xbf16>
    %74 = vector.shape_cast %73 : vector<1x8x8xbf16> to vector<8x8xbf16>
    %cst_38 = arith.constant dense<0.000000e+00> : vector<64x8xf32>
    %75 = tpu.matmul %72, %74, %cst_38 {dimension_numbers = #tpu.dot_dimension_numbers<[1], [0], [0], [1], [0, 0, 1, 1], [], []>} : vector<64x8xbf16>, vector<8x8xbf16>, vector<64x8xf32> -> vector<64x8xf32>
    %76 = arith.addf %66, %75 : vector<64x8xf32>
    %c16_39 = arith.constant 16 : index
    %c0_40 = arith.constant 0 : index
    %77 = vector.load %arg8[%c16_39, %c0_40] : memref<96x8xf32, #tpu.memory_space<vmem>>, vector<64x8xf32>
    %78 = arith.truncf %77 : vector<64x8xf32> to vector<64x8xbf16>
    %c4 = arith.constant 4 : index
    %c0_41 = arith.constant 0 : index
    %c0_42 = arith.constant 0 : index
    %79 = vector.load %arg5[%c4, %c0_41, %c0_42] : memref<9x8x8xbf16, #tpu.memory_space<vmem>>, vector<1x8x8xbf16>
    %80 = vector.shape_cast %79 : vector<1x8x8xbf16> to vector<8x8xbf16>
    %cst_43 = arith.constant dense<0.000000e+00> : vector<64x8xf32>
    %81 = tpu.matmul %78, %80, %cst_43 {dimension_numbers = #tpu.dot_dimension_numbers<[1], [0], [0], [1], [0, 0, 1, 1], [], []>} : vector<64x8xbf16>, vector<8x8xbf16>, vector<64x8xf32> -> vector<64x8xf32>
    %82 = arith.addf %76, %81 : vector<64x8xf32>
    %c17 = arith.constant 17 : index
    %c0_44 = arith.constant 0 : index
    %83 = vector.load %arg8[%c17, %c0_44] : memref<96x8xf32, #tpu.memory_space<vmem>>, vector<64x8xf32>
    %cst_45 = arith.constant 0.000000e+00 : f32
    %84 = vector.broadcast %cst_45 : f32 to vector<64x8xf32>
    %85 = vector.shape_cast %33 : vector<64x1xi1> to vector<64x1xi1>
    %86 = vector.broadcast %85 : vector<64x1xi1> to vector<64x8xi1>
    %87 = arith.select %86, %83, %84 : vector<64x8xi1>, vector<64x8xf32>
    %88 = arith.truncf %87 : vector<64x8xf32> to vector<64x8xbf16>
    %c5 = arith.constant 5 : index
    %c0_46 = arith.constant 0 : index
    %c0_47 = arith.constant 0 : index
    %89 = vector.load %arg5[%c5, %c0_46, %c0_47] : memref<9x8x8xbf16, #tpu.memory_space<vmem>>, vector<1x8x8xbf16>
    %90 = vector.shape_cast %89 : vector<1x8x8xbf16> to vector<8x8xbf16>
    %cst_48 = arith.constant dense<0.000000e+00> : vector<64x8xf32>
    %91 = tpu.matmul %88, %90, %cst_48 {dimension_numbers = #tpu.dot_dimension_numbers<[1], [0], [0], [1], [0, 0, 1, 1], [], []>} : vector<64x8xbf16>, vector<8x8xbf16>, vector<64x8xf32> -> vector<64x8xf32>
    %92 = arith.addf %82, %91 : vector<64x8xf32>
    %c23 = arith.constant 23 : index
    %c0_49 = arith.constant 0 : index
    %93 = vector.load %arg8[%c23, %c0_49] : memref<96x8xf32, #tpu.memory_space<vmem>>, vector<64x8xf32>
    %cst_50 = arith.constant 0.000000e+00 : f32
    %94 = vector.broadcast %cst_50 : f32 to vector<64x8xf32>
    %95 = vector.shape_cast %36 : vector<64x1xi1> to vector<64x1xi1>
    %96 = vector.broadcast %95 : vector<64x1xi1> to vector<64x8xi1>
    %97 = arith.select %96, %93, %94 : vector<64x8xi1>, vector<64x8xf32>
    %98 = arith.truncf %97 : vector<64x8xf32> to vector<64x8xbf16>
    %c6 = arith.constant 6 : index
    %c0_51 = arith.constant 0 : index
    %c0_52 = arith.constant 0 : index
    %99 = vector.load %arg5[%c6, %c0_51, %c0_52] : memref<9x8x8xbf16, #tpu.memory_space<vmem>>, vector<1x8x8xbf16>
    %100 = vector.shape_cast %99 : vector<1x8x8xbf16> to vector<8x8xbf16>
    %cst_53 = arith.constant dense<0.000000e+00> : vector<64x8xf32>
    %101 = tpu.matmul %98, %100, %cst_53 {dimension_numbers = #tpu.dot_dimension_numbers<[1], [0], [0], [1], [0, 0, 1, 1], [], []>} : vector<64x8xbf16>, vector<8x8xbf16>, vector<64x8xf32> -> vector<64x8xf32>
    %102 = arith.addf %92, %101 : vector<64x8xf32>
    %c24 = arith.constant 24 : index
    %c0_54 = arith.constant 0 : index
    %103 = vector.load %arg8[%c24, %c0_54] : memref<96x8xf32, #tpu.memory_space<vmem>>, vector<64x8xf32>
    %cst_55 = arith.constant 0.000000e+00 : f32
    %104 = vector.broadcast %cst_55 : f32 to vector<64x8xf32>
    %105 = vector.shape_cast %29 : vector<64x1xi1> to vector<64x1xi1>
    %106 = vector.broadcast %105 : vector<64x1xi1> to vector<64x8xi1>
    %107 = arith.select %106, %103, %104 : vector<64x8xi1>, vector<64x8xf32>
    %108 = arith.truncf %107 : vector<64x8xf32> to vector<64x8xbf16>
    %c7_56 = arith.constant 7 : index
    %c0_57 = arith.constant 0 : index
    %c0_58 = arith.constant 0 : index
    %109 = vector.load %arg5[%c7_56, %c0_57, %c0_58] : memref<9x8x8xbf16, #tpu.memory_space<vmem>>, vector<1x8x8xbf16>
    %110 = vector.shape_cast %109 : vector<1x8x8xbf16> to vector<8x8xbf16>
    %cst_59 = arith.constant dense<0.000000e+00> : vector<64x8xf32>
    %111 = tpu.matmul %108, %110, %cst_59 {dimension_numbers = #tpu.dot_dimension_numbers<[1], [0], [0], [1], [0, 0, 1, 1], [], []>} : vector<64x8xbf16>, vector<8x8xbf16>, vector<64x8xf32> -> vector<64x8xf32>
    %112 = arith.addf %102, %111 : vector<64x8xf32>
    %c25 = arith.constant 25 : index
    %c0_60 = arith.constant 0 : index
    %113 = vector.load %arg8[%c25, %c0_60] : memref<96x8xf32, #tpu.memory_space<vmem>>, vector<64x8xf32>
    %cst_61 = arith.constant 0.000000e+00 : f32
    %114 = vector.broadcast %cst_61 : f32 to vector<64x8xf32>
    %115 = vector.shape_cast %37 : vector<64x1xi1> to vector<64x1xi1>
    %116 = vector.broadcast %115 : vector<64x1xi1> to vector<64x8xi1>
    %117 = arith.select %116, %113, %114 : vector<64x8xi1>, vector<64x8xf32>
    %118 = arith.truncf %117 : vector<64x8xf32> to vector<64x8xbf16>
    %c8_62 = arith.constant 8 : index
    %c0_63 = arith.constant 0 : index
    %c0_64 = arith.constant 0 : index
    %119 = vector.load %arg5[%c8_62, %c0_63, %c0_64] : memref<9x8x8xbf16, #tpu.memory_space<vmem>>, vector<1x8x8xbf16>
    %120 = vector.shape_cast %119 : vector<1x8x8xbf16> to vector<8x8xbf16>
    %cst_65 = arith.constant dense<0.000000e+00> : vector<64x8xf32>
    %121 = tpu.matmul %118, %120, %cst_65 {dimension_numbers = #tpu.dot_dimension_numbers<[1], [0], [0], [1], [0, 0, 1, 1], [], []>} : vector<64x8xbf16>, vector<8x8xbf16>, vector<64x8xf32> -> vector<64x8xf32>
    %122 = arith.addf %112, %121 : vector<64x8xf32>
    %c0_66 = arith.constant 0 : index
    %c0_67 = arith.constant 0 : index
    %c0_68 = arith.constant 0 : index
    %c0_69 = arith.constant 0 : index
    %123 = vector.load %arg2[%c0_66, %c0_67, %c0_68, %c0_69] : memref<1x8x8x4xf32, #tpu.memory_space<vmem>>, vector<1x8x8x4xf32>
    %124 = vector.shape_cast %123 : vector<1x8x8x4xf32> to vector<64x4xf32>
    %125 = arith.truncf %124 : vector<64x4xf32> to vector<64x4xbf16>
    %c0_70 = arith.constant 0 : index
    %c0_71 = arith.constant 0 : index
    %126 = vector.load %arg6[%c0_70, %c0_71] : memref<4x8xbf16, #tpu.memory_space<vmem>>, vector<4x8xbf16>
    %cst_72 = arith.constant dense<0.000000e+00> : vector<64x8xf32>
    %127 = tpu.matmul %125, %126, %cst_72 {dimension_numbers = #tpu.dot_dimension_numbers<[1], [0], [0], [1], [0, 0, 1, 1], [], []>} : vector<64x4xbf16>, vector<4x8xbf16>, vector<64x8xf32> -> vector<64x8xf32>
    %128 = arith.addf %127, %122 : vector<64x8xf32>
    %129 = vector.shape_cast %128 : vector<64x8xf32> to vector<1x8x8x8xf32>
    %c0_73 = arith.constant 0 : index
    %c0_74 = arith.constant 0 : index
    %c0_75 = arith.constant 0 : index
    %c0_76 = arith.constant 0 : index
    %130 = vector.load %arg7[%c0_73, %c0_74, %c0_75, %c0_76] : memref<1x8x8x8xf32, #tpu.memory_space<vmem>>, vector<1x8x8x8xf32>
    tpu.vector_store %arg7[%c0_73, %c0_74, %c0_75, %c0_76], %129 {strides = array<i32>} : memref<1x8x8x8xf32, #tpu.memory_space<vmem>>, vector<1x8x8x8xf32>,
    return
  }
  func.func @transform_0(%arg0: i32) -> (i32, i32, i32, i32) {
    %c0_i32 = arith.constant 0 : i32
    %c0_i32_0 = arith.constant 0 : i32
    %c0_i32_1 = arith.constant 0 : i32
    %c0_i32_2 = arith.constant 0 : i32
    return %arg0, %c0_i32, %c0_i32_0, %c0_i32_1 : i32, i32, i32, i32
  }
  func.func @transform_1(%arg0: i32) -> (i32, i32, i32, i32) {
    %c0_i32 = arith.constant 0 : i32
    %c0_i32_0 = arith.constant 0 : i32
    %c0_i32_1 = arith.constant 0 : i32
    %c0_i32_2 = arith.constant 0 : i32
    return %arg0, %c0_i32, %c0_i32_0, %c0_i32_1 : i32, i32, i32, i32
  }
  func.func @transform_2(%arg0: i32) -> (i32, i32) {
    %c0_i32 = arith.constant 0 : i32
    %c0_i32_0 = arith.constant 0 : i32
    %c0_i32_1 = arith.constant 0 : i32
    return %c0_i32, %c0_i32_0 : i32, i32
  }
  func.func @transform_3(%arg0: i32) -> (i32, i32) {
    %c0_i32 = arith.constant 0 : i32
    %c0_i32_0 = arith.constant 0 : i32
    %c0_i32_1 = arith.constant 0 : i32
    return %c0_i32, %c0_i32_0 : i32, i32
  }
  func.func @transform_4(%arg0: i32) -> (i32, i32, i32) {
    %c0_i32 = arith.constant 0 : i32
    %c0_i32_0 = arith.constant 0 : i32
    %c0_i32_1 = arith.constant 0 : i32
    %c0_i32_2 = arith.constant 0 : i32
    return %c0_i32, %c0_i32_0, %c0_i32_1 : i32, i32, i32
  }
  func.func @transform_5(%arg0: i32) -> (i32, i32) {
    %c0_i32 = arith.constant 0 : i32
    %c0_i32_0 = arith.constant 0 : i32
    %c0_i32_1 = arith.constant 0 : i32
    return %c0_i32, %c0_i32_0 : i32, i32
  }
  func.func @transform_6(%arg0: i32) -> (i32, i32, i32, i32) {
    %c0_i32 = arith.constant 0 : i32
    %c0_i32_0 = arith.constant 0 : i32
    %c0_i32_1 = arith.constant 0 : i32
    %c0_i32_2 = arith.constant 0 : i32
    return %arg0, %c0_i32, %c0_i32_0, %c0_i32_1 : i32, i32, i32, i32
  }
}

</mosaic_0001>

<bundles_post_ra>
// kernel: _forward_impl.3
= control target key start
LH: loop header
LB: loop body
LE: loop exit
PB: predicated region body
PF: predicated region fallthrough
CT: control target
= control target key end

     0   :  { %11 = vsyncpa [#allocation4], 0  ;;  %s3112_s0 = inlined_call_operand.vmem [shape: bf16[2,8,8,8], index: 0, kind: input, shape index: {}]   ;;  %s3113_s1 = inlined_call_operand.vmem [shape: f32[2,8,8,4], index: 1, kind: input, shape index: {}]   ;;  %s3114_s2 = inlined_call_operand.vmem [shape: f32[1,8], index: 2, kind: input, shape index: {}]   ;;  %s3115_s3 = inlined_call_operand.vmem [shape: f32[1,8], index: 3, kind: input, shape index: {}]   ;;  %s3116_s4 = inlined_call_operand.vmem [shape: bf16[9,8,8], index: 4, kind: input, shape index: {}]   ;;  %s3117_s5 = inlined_call_operand.vmem [shape: bf16[4,8], index: 5, kind: input, shape index: {}]   ;;  %s3118_s6 = inlined_call_operand.hbm [shape: f32[2,8,8,8], index: 6, kind: output, shape index: {}]  }
   0x1   :  { %13 = vsyncpa [#allocation4 + $0x1], 0  ;;  %s2199_s21 = smov 0   ;;  %s2201_s22 = smov 0  }
   0x2   :  { %s2203_s23 = smov 0   ;;  %s2205_s24 = smov 0  }
   0x3 LB: > { %s2220_s25 = sadd.s32 4294967295, %s2158_s24   ;;  %s1736_s26 = sadd.s32 4294967294, %s2158_s24   ;;  %s2158_s24 = sphi %s2205_s24, %s3353_s24   ;;  %s2154_s23 = sphi %s2203_s23, %s3352_s23   ;;  %s2150_s22 = sphi %s2201_s22, %s3351_s22   ;;  %s2146_s21 = sphi %s2199_s21, %s3350_s21  }
   0x4   : > { %s2224_s27 = sadd.s32 1, %s2158_s24   ;;  %s162_s28 = sadd.s32 1, %s2154_s23 }
   0x5   : > { %s159_s29 = ssub.s32 %s2158_s24, %s2224_s27  ;;  %p172_p0 = scmp.ne.s32.totalorder %s2154_s23, %s2150_s22 }
   0x6   : > { %p160_p1 = scmp.eq.s32.totalorder %s159_s29, 0  ;;  %p173_p2 = scmp.eq.s32.totalorder %s2220_s25, 1 }
   0x7   : > { %p178_p3 = scmp.ne.s32.totalorder %s2150_s22, %s2146_s21  ;;  %p179_p4 = scmp.eq.s32.totalorder %s1736_s26, 1 }
   0x8   : > { %s2235_s30 = scalar_select %p160_p1, %s2154_s23, %s162_s28  }
   0x9   : > { %p2237_p5 = por %p173_p2, %p172_p0  ;;  %p2241_p6 = por %p179_p4, %p178_p3 }
   0xa   : > { %p1739_p7 = scmp.ge.s32.totalorder %s2158_s24, 1  ;;  %p225_p8 = scmp.lt.s32.totalorder %s2158_s24, 3 }
   0xc   : > { %p226_p9 = pnand %p1739_p7, %p225_p8 }
   0xe   : > { %229 = sbr.rel (%p226_p9) target bundleno = 371 (0x173), region = 44 }
  0x15   : > { %v1747_v0 = vld [vmem:[%s3116_s4 + $0x4] sm:$0xf]  ;;  %vm3119_vm0 = vcmask 1043456   ;;  %v1771_v1 = vld [vmem:[%s3116_s4 + $0x14] sm:$0xf]  ;;  %p260_p10 = scmp.lt.s32.totalorder %s2220_s25, 1  ;;  %v354_v2 = vlaneseq }
  0x16   : > { %2044 = vmatprep.subr.msk.bf16.mxu1 %vm3119_vm0, %v1747_v0  ;;  %2049 = vmatprep.subr.msk.bf16.mxu0 %vm3119_vm0, %v1771_v1  ;;  %v540_v3 = vsel %vm3119_vm0, %v1747_v0, 0  ;;  %v1092_v4 = vsel %vm3119_vm0, %v1771_v1, 0  ;;  %vm3125_vm1 = vcmask 64512   ;;  %v2160_v5 = vmov 0.0   ;;  %v2270_v7 = vld [vmem:[%s3116_s4] sm:$0xf] }
  0x17   : > { %1873 = vmatpush3.bf16.msra.mxu1 %v540_v3  ;;  %1923 = vmatpush3.bf16.msra.mxu0 %v1092_v4  ;;  %s2259_s13 = scalar_select %p260_p10, %s2220_s25, 1  ;;  %273 = vst.msk [vmem:[#allocation2 + $0x8] sm:$0xff] %vm3125_vm1, %v2160_v5  ;;  %v2262_v6 = vshrl.u32 %v354_v2, 7  ;;  %272 = vst.msk [vmem:[#allocation2] sm:$0xff] %vm3125_vm1, %v2160_v5  ;;  %v2277_v8 = vld [vmem:[%s3116_s4 + $0x18] sm:$0xf] }
  0x18   : > { %274 = vst.msk [vmem:[#allocation2 + $0x50] sm:$0xff] %vm3125_vm1, %v2160_v5  ;;  %275 = vst.msk [vmem:[#allocation2 + $0x58] sm:$0xff] %vm3125_vm1, %v2160_v5  ;;  %2045 = vmatprep.subr.msk.bf16.mxu1 %vm3119_vm0, %v2270_v7  ;;  %2050 = vmatprep.subr.msk.bf16.mxu0 %vm3119_vm0, %v2277_v8  ;;  %v2293_v10 = vld [vmem:[%s3114_s2] ss:$0 sm:$0xff]  ;;  %v3157_v60 = vmov 0  ;;  %v3159_v62 = vmov 0 }
  0x19   : > { %s1800_s18 = sshll.u32 %s2259_s13, 5  ;;  %v2281_v9 = vadd.s32 8, %v2262_v6  ;;  %v371_v15 = vshra.s32 %v2262_v6, 3  ;;  %v2302_v18 = vld [vmem:[%s3115_s3] ss:$0 sm:$0xff]  ;;  %v2309_v25 = vadd.s32 16, %v2262_v6 }
  0x1a   : > { %s2288_s26 = scalar_lea.vmem %s3112_s0, %s1800_s18  ;;  %v2312_v26 = vadd.s32 24, %v2262_v6  ;;  %v363_v47 = vand.u32 7, %v2262_v6  ;;  %v2336_v53 = vadd.s32 32, %v2262_v6  ;;  %v2343_v56 = vadd.s32 40, %v2262_v6  ;;  %s1801_s9 = sshll.u32 %s2259_s13, 6 }
  0x1b   : > { %v1804_v11 = vld [vmem:[%s2288_s26] sm:$0xff]   ;;  %v1820_v12 = vld [vmem:[%s2288_s26 + $0x10] sm:$0xff]   ;;  %v1819_v13 = vld [vmem:[%s2288_s26 + $0x8] sm:$0xff]   ;;  %v372_v19 = vshra.s32 %v2281_v9, 3  ;;  %v2315_v28 = vand.u32 7, %v371_v15  ;;  %v373_v42 = vshra.s32 %v2309_v25, 3  ;;  %s269_s12 = scalar_lea.vmem %s3113_s1, %s1801_s9 }
  0x1c   : > { %v1805_v14 = vunpack.c.l.bf16 %v1804_v11  ;;  %v1806_v16 = vunpack.c.h.bf16 %v1804_v11  ;;  %v1813_v17 = vunpack.c.l.bf16 %v1820_v12  ;;  %v1809_v20 = vunpack.c.l.bf16 %v1819_v13  ;;  %v2349_v58 = vld [vmem:[%s2288_s26 + $0x18] sm:$0xff]   ;;  %s257_s13 = sand.u32 1, %s2150_s22   ;;  %s1802_s16 = sshll.u32 %s2220_s25, 10 }
  0x1d   : > { %v1810_v22 = vunpack.c.h.bf16 %v1819_v13  ;;  %v1814_v31 = vunpack.c.h.bf16 %v1820_v12  ;;  %v2319_v32 = vand.u32 7, %v372_v19  ;;  %v374_v48 = vshra.s32 %v2312_v26, 3  ;;  %s1740_s14 = sshll.u32 %s257_s13, 6  ;;  %s3062_s20 = scalar_lea.hbm %s3118_s6, %s1802_s16 }
  0x1e   : > { %v299_v21 = vmul.f32 %v1805_v14, %v2293_v10  ;;  %v300_v23 = vmul.f32 %v1806_v16, %v2293_v10  ;;  %v301_v24 = vmul.f32 %v1809_v20, %v2293_v10  ;;  %v303_v34 = vmul.f32 %v1813_v17, %v2293_v10  ;;  %v488_v50 = vld [vmem:[#allocation2 + $0x8] sm:$0xff]  ;;  %s259_s15 = scalar_lea.vmem [#allocation3], %s1740_s14  ;;  %s3071_s25 = scalar_lea.sflag [#allocation4], %s257_s13 }
  0x1f   : > { %v302_v29 = vmul.f32 %v1810_v22, %v2293_v10  ;;  %v304_v49 = vmul.f32 %v1814_v31, %v2293_v10  ;;  %vm3121_vm7 = vcmp.ge.s32.totalorder %v2315_v28, 1  ;;  %v364_v51 = vand.u32 7, %v2281_v9  ;;  %s1662_s17 = sshll.u32 %s259_s15, 4  ;;  %s2161_s28 = smov [#allocation3]   ;;  %s3064_s17 = int_to_ptr.vmem [resolvable:$true] %s1662_s17 }
  0x20   : > { %v314_v27 = vadd.f32 %v2302_v18, %v299_v21  ;;  %v315_v30 = vadd.f32 %v2302_v18, %v300_v23  ;;  %v316_v33 = vadd.f32 %v2302_v18, %v301_v24  ;;  %v318_v39 = vadd.f32 %v2302_v18, %v303_v34  ;;  %s2096_s26 = scalar_lea.vmem %s3064_s17, 1024  ;;  %s2100_s29 = sshll.u32 %s2161_s28, 4  ;;  %s2101_s29 = int_to_ptr.vmem [resolvable:$false] %s2100_s29 }
  0x21   : > { %v317_v36 = vadd.f32 %v2302_v18, %v302_v29  ;;  %v2339_v54 = vand.u32 7, %v373_v42  ;;  %v319_v55 = vadd.f32 %v2302_v18, %v304_v49  ;;  %vm3122_vm8 = vcmp.ge.s32.totalorder %v2319_v32, 1  ;;  %p2097_p11 = scmp.ne.s32.totalorder %s3064_s17, %s2096_s26  ;;  %s2102_s9 = scalar_lea.vmem %s2101_s29, 2048 }
  0x22   : > { %vm322_vm2 = vcmp.ge.f32.partialorder %v314_v27, 0.0  ;;  %v330_v35 = vmul.f32 0.1, %v314_v27  ;;  %vm323_vm3 = vcmp.ge.f32.partialorder %v315_v30, 0.0  ;;  %vm324_vm4 = vcmp.ge.f32.partialorder %v316_v33, 0.0  ;;  %p2103_p0 = scmp.lt.s32.totalorder %s3064_s17, %s2101_s29  ;;  %p2104_p1 = scmp.lt.s32.totalorder %s2102_s9, %s2096_s26 }
  0x23   : > { %v331_v37 = vmul.f32 0.1, %v315_v30  ;;  %v332_v38 = vmul.f32 0.1, %v316_v33  ;;  %vm325_vm5 = vcmp.ge.f32.partialorder %v317_v36, 0.0  ;;  %vm326_vm6 = vcmp.ge.f32.partialorder %v318_v39, 0.0  ;;  %p2098_p12 = pnand %p2097_p11, %p2237_p5 }
  0x24   : > { %v338_v40 = vsel %vm322_vm2, %v314_v27, %v330_v35  ;;  %v333_v41 = vmul.f32 0.1, %v317_v36  ;;  %v334_v45 = vmul.f32 0.1, %v318_v39  ;;  %v2346_v57 = vand.u32 7, %v374_v48  ;;  %p2105_p2 = por %p2104_p1, %p2103_p0 }
  0x25   : > { %346 = vst.msk [vmem:[#allocation2 + $0x10] sm:$0xff] %vm3125_vm1, %v338_v40  ;;  %v339_v43 = vsel %vm323_vm3, %v315_v30, %v331_v37  ;;  %v340_v44 = vsel %vm324_vm4, %v316_v33, %v332_v38  ;;  %v512_v59 = vsel %vm3121_vm7, %v488_v50, 0.0  ;;  %vm2355_vm9 = vcmp.lt.s32.totalorder %v363_v47, 7  ;;  %p2099_p13 = pneg %p2098_p12 }
  0x26   : > { %v341_v46 = vsel %vm325_vm5, %v317_v36, %v333_v41  ;;  %347 = vst.msk [vmem:[#allocation2 + $0x18] sm:$0xff] %vm3125_vm1, %v339_v43  ;;  %348 = vst.msk [vmem:[#allocation2 + $0x20] sm:$0xff] %vm3125_vm1, %v340_v44  ;;  %v342_v52 = vsel %vm326_vm6, %v318_v39, %v334_v45  ;;  %v3158_v60 = vsel %vm2355_vm9, 4294967295, %v3157_v60  ;;  %vm327_vm10 = vcmp.ge.f32.partialorder %v319_v55, 0.0  ;;  %v2433_v39 = vld [vmem:[%s3116_s4 + $0x8] sm:$0xf] }
  0x27   : > { %349 = vst.msk [vmem:[#allocation2 + $0x28] sm:$0xff] %vm3125_vm1, %v341_v46  ;;  %350 = vst.msk [vmem:[#allocation2 + $0x30] sm:$0xff] %vm3125_vm1, %v342_v52  ;;  %v335_v61 = vmul.f32 0.1, %v319_v55  ;;  %vm2361_vm11 = vcmp.lt.s32.totalorder %v364_v51, 7  ;;  %v365_v63 = vand.u32 7, %v2309_v25  ;;  %v1817_v5 = vunpack.c.l.bf16 %v2349_v58  ;;  %p2106_p3 = pnand %p2105_p2, %p2099_p13 }
  0x28   : > { %v3160_v62 = vsel %vm2361_vm11, 4294967295, %v3159_v62  ;;  %v366_v0 = vand.u32 7, %v2312_v26  ;;  %v375_v1 = vshra.s32 %v2336_v53, 3  ;;  %vm3126_vm12 = vcmp.ge.s32.totalorder %v2339_v54, 1  ;;  %v2461_v46 = vld [vmem:[%s3116_s4 + $0x1c] sm:$0xf] }
  0x29   : > { %v343_v3 = vsel %vm327_vm10, %v319_v55, %v335_v61  ;;  %v376_v4 = vshra.s32 %v2343_v56, 3  ;;  %vm3124_vm13 = vcmp.ge.s32.totalorder %v2346_v57, 1  ;;  %vm2399_vm14 = vcmp.lt.s32.totalorder %v365_v63, 7 }
  0x2a   : > { %351 = vst.msk [vmem:[#allocation2 + $0x38] sm:$0xff] %vm3125_vm1, %v343_v3  ;;  %v3161_v23 = vmov 0  ;;  %vm2405_vm15 = vcmp.lt.s32.totalorder %v366_v0, 7  ;;  %v3163_v24 = vmov 0  ;;  %v2413_v29 = vand.u32 7, %v375_v1 }
  0x2b   : > { %v3162_v23 = vsel %vm2399_vm14, 4294967295, %v3161_v23  ;;  %v3164_v24 = vsel %vm2405_vm15, 4294967295, %v3163_v24  ;;  %v2415_v30 = vand.u32 7, %v376_v4  ;;  %v305_v31 = vmul.f32 %v1817_v5, %v2293_v10 }
  0x2c   : > { %v2368_v2 = vld [vmem:[#allocation2 + $0x10] sm:$0xff]  ;;  %v620_v34 = vsel %vm3119_vm0, %v2270_v7, 0  ;;  %v1218_v40 = vsel %vm3119_vm0, %v2277_v8, 0  ;;  %v2442_v41 = vadd.s32 48, %v2262_v6  ;;  %v2445_v42 = vadd.s32 56, %v2262_v6 }
  0x2d   : > { %v513_v11 = vsel %vm3122_vm8, %v2368_v2, 0.0  ;;  %v2376_v12 = vld [vmem:[#allocation2 + $0x11] sm:$0xff]  ;;  %v2378_v13 = vld [vmem:[#allocation2 + $0x19] sm:$0xff]  ;;  %vm3123_vm2 = vcmp.ge.s32.totalorder %v2413_v29, 1  ;;  %vm3120_vm3 = vcmp.ge.s32.totalorder %v2415_v30, 1  ;;  %v320_v44 = vadd.f32 %v2302_v18, %v305_v31 }
  0x2e   : > { %v2381_v14 = vld [vmem:[#allocation2 + $0x18] sm:$0xff]  ;;  %v520_v15 = vpack.c.bf16 %v513_v11, %v512_v59  ;;  %v1065_v16 = vsel %vm2355_vm9, %v2376_v12, 0.0  ;;  %v1066_v17 = vsel %vm2361_vm11, %v2378_v13, 0.0  ;;  %v2390_v19 = vld [vmem:[#allocation2 + $0x20] sm:$0xff]  ;;  %v2421_v35 = vld [vmem:[#allocation2 + $0x29] sm:$0xff]  ;;  %vm2466_vm5 = vcmp.ge.s32.totalorder %v363_v47, 1 }
  0x2f   : > { %v1073_v20 = vpack.c.bf16 %v1066_v17, %v1065_v16  ;;  %v2392_v21 = vld [vmem:[#allocation2 + $0x21] sm:$0xff]  ;;  %v514_v22 = vsel %vm3126_vm12, %v2381_v14, 0.0  ;;  %v515_v27 = vsel %vm3124_vm13, %v2390_v19, 0.0  ;;  %v2425_v37 = vld [vmem:[#allocation2 + $0x30] sm:$0xff]  ;;  %v1068_v7 = vsel %vm2405_vm15, %v2421_v35, 0.0  ;;  %vm2494_vm10 = vmand %vm3121_vm7, %vm2466_vm5 }
  0x30   : > { %1874 = vmatprep.mubr.msk.bf16.mxu1 %vm3125_vm1, %v520_v15  ;;  %v521_v33 = vpack.c.bf16 %v515_v27, %v514_v22  ;;  %v2423_v36 = vld [vmem:[#allocation2 + $0x28] sm:$0xff]  ;;  %v1067_v38 = vsel %vm2399_vm14, %v2392_v21, 0.0  ;;  %v517_v8 = vsel %vm3120_vm3, %v2425_v37, 0.0  ;;  %vm328_vm4 = vcmp.ge.f32.partialorder %v320_v44, 0.0 }
  0x31   : > { %1924 = vmatprep.mubr.msk.bf16.mxu0 %vm3125_vm1, %v1073_v20  ;;  %v1074_v43 = vpack.c.bf16 %v1068_v7, %v1067_v38  ;;  %v516_v45 = vsel %vm3123_vm2, %v2423_v36, 0.0  ;;  %v336_v49 = vmul.f32 0.1, %v320_v44  ;;  %v3165_v50 = vmov 0  ;;  %v2506_v4 = vld [vmem:[#allocation2 + $0xf] sm:$0xff]  ;;  %v2516_v11 = vld [vmem:[#allocation2 + $0x38] sm:$0xff] }
  0x32   : > { %1875 = vmatmul.mubr.msk.bf16.vlgmr.msra.gmra.mrb[0].mxu1 %vm3125_vm1, %v521_v33  ;;  %v522_v48 = vpack.c.bf16 %v517_v8, %v516_v45  ;;  %v3166_v50 = vsel %vm2466_vm5, 4294967295, %v3165_v50  ;;  %v377_v52 = vshra.s32 %v2442_v41, 3  ;;  %v378_v55 = vshra.s32 %v2445_v42, 3 }
  0x33   : > { %1883 = vmatpush3.bf16.msra.mxu1 %v620_v34  ;;  %1925 = vmatmul.mubr.msk.bf16.vlgmr.msra.gmra.mrb[0].mxu0 %vm3125_vm1, %v1074_v43  ;;  %vm2474_vm6 = vcmp.ge.s32.totalorder %v364_v51, 1  ;;  %v3167_v59 = vmov 0  ;;  %v344_v61 = vsel %vm328_vm4, %v320_v44, %v336_v49  ;;  %v367_v6 = vand.u32 7, %v2336_v53  ;;  %v2602_v49 = vld [vmem:[#allocation2 + $0x1f] sm:$0xff] }
  0x34   : > { %2046 = vmatprep.subr.msk.bf16.mxu1 %vm3119_vm0, %v2433_v39  ;;  %1933 = vmatpush3.bf16.msra.mxu0 %v1218_v40  ;;  %v3168_v59 = vsel %vm2474_vm6, 4294967295, %v3167_v59  ;;  %v1818_v47 = vunpack.c.h.bf16 %v2349_v58  ;;  %352 = vst.msk [vmem:[#allocation2 + $0x40] sm:$0xff] %vm3125_vm1, %v344_v61  ;;  %v368_v1 = vand.u32 7, %v2343_v56  ;;  %v2485_v3 = vand.u32 7, %v377_v52  ;;  %v451_v58 = vld [vmem:[#allocation2 + $0x7] sm:$0xff]  ;;  %vm2502_vm4 = vmand %vm3122_vm8, %vm2474_vm6 }
  0x35   : > { %1878 = vmatprep.mubr.msk.bf16.mxu1 %vm3125_vm1, %v522_v48  ;;  %2051 = vmatprep.subr.msk.bf16.mxu0 %vm3119_vm0, %v2461_v46  ;;  %v2487_v9 = vand.u32 7, %v378_v55  ;;  %vm3128_vm0 = vcmp.lt.s32.totalorder %v2315_v28, 7  ;;  %vm2511_vm3 = vcmp.lt.s32.totalorder %v367_v6, 7  ;;  %v3173_v5 = vmov 0  ;;  %v2600_v48 = vld [vmem:[#allocation2 + $0x17] sm:$0xff]  ;;  %v2653_v56 = vld [vmem:[#allocation2 + $0x27] sm:$0xff] }
  0x36   : > { %v306_v51 = vmul.f32 %v1818_v47, %v2293_v10  ;;  %v2509_v10 = vld [vmem:[#allocation2 + $0x31] sm:$0xff]  ;;  %v3174_v5 = vsel %vm2511_vm3, 4294967295, %v3173_v5  ;;  %vm3127_vm7 = vcmp.ge.s32.totalorder %v2485_v3, 1  ;;  %vm2522_vm2 = vcmp.ge.s32.totalorder %v365_v63, 1 }
  0x37   : > { %v3175_v16 = vmov 0  ;;  %vm2526_vm13 = vcmp.lt.s32.totalorder %v368_v1, 7  ;;  %v3177_v17 = vmov 0  ;;  %v475_v20 = vsel %vm2494_vm10, %v451_v58, 0.0  ;;  %vm2552_vm10 = vmand %vm3128_vm0, %vm2466_vm5 }
  0x38   : > { %v321_v15 = vadd.f32 %v2302_v18, %v306_v51  ;;  %v3176_v16 = vsel %vm2522_vm2, 4294967295, %v3175_v16  ;;  %v3178_v17 = vsel %vm2526_vm13, 4294967295, %v3177_v17  ;;  %v476_v18 = vsel %vm2502_vm4, %v2506_v4, 0.0 }
  0x39   : > { %vm2538_vm8 = vcmp.ge.s32.totalorder %v366_v0, 1  ;;  %v3179_v25 = vmov 0  ;;  %v1069_v63 = vsel %vm2511_vm3, %v2509_v10, 0.0  ;;  %v518_v27 = vsel %vm3127_vm7, %v2516_v11, 0.0 }
  0x3a   : > { %vm329_vm12 = vcmp.ge.f32.partialorder %v321_v15, 0.0  ;;  %v337_v22 = vmul.f32 0.1, %v321_v15  ;;  %v3180_v25 = vsel %vm2538_vm8, 4294967295, %v3179_v25  ;;  %v369_v34 = vand.u32 7, %v2442_v41 }
  0x3b   : > { %v2556_v26 = vld [vmem:[#allocation2 + $0x39] sm:$0xff]  ;;  %vm3183_vm4 = vcmp.lt.s32.totalorder %v2319_v32, 7  ;;  %vm2569_vm1 = vcmp.ge.s32.totalorder %v367_v6, 1  ;;  %v3186_v7 = vmov 0  ;;  %vm3188_vm0 = vcmp.ge.s32.totalorder %v2339_v54, 1 }
  0x3c   : > { %v2558_v0 = vld [vmem:[#allocation2 + $0x40] sm:$0xff]  ;;  %v345_v33 = vsel %vm329_vm12, %v321_v15, %v337_v22  ;;  %vm2565_vm7 = vmand %vm3183_vm4, %vm2474_vm6  ;;  %v3187_v7 = vsel %vm2569_vm1, 4294967295, %v3186_v7  ;;  %v1070_v41 = vsel %vm2526_vm13, %v2556_v26, 0.0  ;;  %vm3191_vm12 = vcmp.ge.s32.totalorder %v2487_v9, 1  ;;  %v2655_v15 = vld [vmem:[#allocation2 + $0x2f] sm:$0xff] }
  0x3d   : > { %vm2577_vm5 = vmand %vm3188_vm0, %vm2522_vm2  ;;  %v519_v43 = vsel %vm3191_vm12, %v2558_v0, 0.0  ;;  %vm3192_vm4 = vcmask 64512   ;;  %v483_v44 = vpack.c.bf16 %v476_v18, %v475_v20  ;;  %vm2588_vm6 = vcmp.ge.s32.totalorder %v368_v1, 1 }
  0x3e   : > { %353 = vst.msk [vmem:[#allocation2 + $0x48] sm:$0xff] %vm3192_vm4, %v345_v33  ;;  %vm3195_vm0 = vcmp.ge.s32.totalorder %v2346_v57, 1  ;;  %v1075_v52 = vpack.c.bf16 %v1070_v41, %v1069_v63  ;;  %v523_v55 = vpack.c.bf16 %v519_v43, %v518_v27  ;;  %v370_v61 = vand.u32 7, %v2445_v42 }
  0x3f   : > { %vm2596_vm3 = vmand %vm3195_vm0, %vm2538_vm8  ;;  %vm3198_vm4 = vcmp.ge.s32.totalorder %v2413_v29, 1  ;;  %vm3201_vm15 = vcmask 64512   ;;  %vm3203_vm11 = vcmp.ge.s32.totalorder %v2415_v30, 1  ;;  %v477_v1 = vsel %vm2577_vm5, %v2600_v48, 0.0 }
  0x40   : > { %vm2610_vm13 = vmand %vm3198_vm4, %vm2569_vm1  ;;  %1928 = vmatprep.mubr.msk.bf16.mxu0 %vm3201_vm15, %v1075_v52  ;;  %vm3206_vm4 = vcmp.ge.s32.totalorder %v2315_v28, 1  ;;  %v478_v51 = vsel %vm2596_vm3, %v2602_v49, 0.0  ;;  %v3209_v53 = vmov 0  ;;  %vm2657_vm3 = vcmp.lt.s32.totalorder %v370_v61, 7 }
  0x41   : > { %vm3202_vm14 = vmmov %vm3201_vm15  ;;  %v3214_v20 = vmov 0  ;;  %v1191_v22 = vsel %vm2552_vm10, %v2600_v48, 0.0  ;;  %v1192_v18 = vsel %vm2565_vm7, %v2602_v49, 0.0  ;;  %vm2667_vm5 = vcmp.ge.s32.totalorder %v369_v34, 1 }
  0x42   : > { %1879 = vmatmul.mubr.msk.bf16.gmra.mrb[4].mxu1 %vm3202_vm14, %v523_v55  ;;  %vm2621_vm8 = vmand %vm3203_vm11, %vm2588_vm6  ;;  %vm2639_vm11 = vcmp.lt.s32.totalorder %v369_v34, 7  ;;  %v3215_v20 = vsel %vm2657_vm3, 4294967295, %v3214_v20  ;;  %v3216_v63 = vmov 0  ;;  %v479_v31 = vsel %vm2610_vm13, %v2653_v56, 0.0 }
  0x43   : > { %vm2629_vm12 = vmand %vm3206_vm4, %vm2355_vm9  ;;  %v3210_v53 = vsel %vm2639_vm11, 4294967295, %v3209_v53  ;;  %1884 = vmatprep.mubr.msk.bf16.mxu1 %vm3202_vm14, %v483_v44  ;;  %vm3211_vm4 = vcmp.lt.s32.totalorder %v2339_v54, 7  ;;  %v3217_v63 = vsel %vm2667_vm5, 4294967295, %v3216_v63  ;;  %vm3218_vm14 = vnez %v3180_v25 }
  0x44   : > { %vm2649_vm0 = vmand %vm3211_vm4, %vm2522_vm2  ;;  %vm3219_vm4 = vcmp.lt.s32.totalorder %v2346_v57, 7  ;;  %v480_v33 = vsel %vm2621_vm8, %v2655_v15, 0.0  ;;  %vm2685_vm7 = vcmp.ge.s32.totalorder %v370_v61, 1  ;;  %v3222_v34 = vmov 0 }
  0x45   : > { %vm2675_vm15 = vmand %vm3219_vm4, %vm3218_vm14  ;;  %v3223_v34 = vsel %vm2685_vm7, 4294967295, %v3222_v34  ;;  %v2689_v38 = vld [vmem:[#allocation2 + $0x41] sm:$0xff]  ;;  %v2691_v40 = vld [vmem:[#allocation2 + $0x49] sm:$0xff]  ;;  %v484_v41 = vpack.c.bf16 %v478_v51, %v477_v1  ;;  %vm3225_vm4 = vcmp.lt.s32.totalorder %v2413_v29, 7  ;;  %v1199_v52 = vpack.c.bf16 %v1192_v18, %v1191_v22 }
  0x46   : > { %3224 = vst [vmem:[#allocation6_spill] sm:$0xff] %v2691_v40  ;;  %vm2698_vm13 = vmand %vm3225_vm4, %vm2569_vm1  ;;  %v1071_v44 = vsel %vm2639_vm11, %v2689_v38, 0.0  ;;  %v1072_v8 = vsel %vm2657_vm3, %v2691_v40, 0.0  ;;  %vm3228_vm8 = vcmp.ge.s32.totalorder %v2485_v3, 1  ;;  %vm3231_vm4 = vcmask 1043456   ;;  %v2718_v1 = vld [vmem:[#allocation2 + $0x37] sm:$0xff] }
  0x47   : > { %vm2712_vm10 = vmand %vm3228_vm8, %vm2667_vm5  ;;  %v1076_v61 = vpack.c.bf16 %v1072_v8, %v1071_v44  ;;  %v738_v6 = vsel %vm3231_vm4, %v2433_v39, 0  ;;  %v485_v42 = vpack.c.bf16 %v480_v33, %v479_v31  ;;  %v2720_v51 = vld [vmem:[#allocation2 + $0x3f] sm:$0xff]  ;;  %vm3232_vm1 = vcmp.ge.s32.totalorder %v2487_v9, 1  ;;  %v1761_v39 = vld [vmem:[%s3116_s4 + $0xc] sm:$0xf] }
  0x48   : > { %vm2726_vm14 = vmand %vm3232_vm1, %vm2685_vm7  ;;  %vm3235_vm8 = vcmp.lt.s32.totalorder %v2415_v30, 7  ;;  %vm3238_vm4 = vnez %v3160_v62  ;;  %vm3239_vm9 = vcmp.ge.s32.totalorder %v2319_v32, 1  ;;  %v687_v33 = vld [vmem:[#allocation2 + $0x9] sm:$0xff]  ;;  %vm3242_vm3 = vcmask 64512  }
  0x49   : > { %vm2734_vm2 = vmand %vm3235_vm8, %vm2588_vm6  ;;  %1929 = vmatmul.mubr.msk.bf16.gmra.mrb[4].mxu0 %vm3242_vm3, %v1076_v61  ;;  %v1193_v44 = vsel %vm2649_vm0, %v2653_v56, 0.0  ;;  %v1194_v8 = vsel %vm2675_vm15, %v2655_v15, 0.0  ;;  %v481_v40 = vsel %vm2712_vm10, %v2718_v1, 0.0  ;;  %v482_v61 = vsel %vm2726_vm14, %v2720_v51, 0.0 }
  0x4a   : > { %vm2745_vm1 = vmand %vm3239_vm9, %vm3238_vm4  ;;  %v1195_v58 = vsel %vm2698_vm13, %v2718_v1, 0.0  ;;  %v1196_v27 = vsel %vm2734_vm2, %v2720_v51, 0.0  ;;  %vm3152_vm0 = vcmp.lt.s32.totalorder %v2485_v3, 7  ;;  %vm3247_vm15 = vnez %v3162_v23 }
  0x4b   : > { %vm3243_vm11 = vmmov %vm3242_vm3  ;;  %v712_v55 = vsel %vm2745_vm1, %v2376_v12, 0.0  ;;  %vm3151_vm2 = vcmp.lt.s32.totalorder %v2487_v9, 7  ;;  %vm3251_vm10 = vnez %v3164_v24  ;;  %v1200_v12 = vpack.c.bf16 %v1194_v8, %v1193_v44  ;;  %v1174_v44 = vld [vmem:[#allocation2 + $0x4f] sm:$0xff] }
  0x4c   : > { %1885 = vmatmul.mubr.msk.bf16.vlgmr.msra.gmra.mrb[0].mxu1 %vm3243_vm11, %v484_v41  ;;  %vm3244_vm8 = vmmov %vm3242_vm3  ;;  %vm3246_vm11 = vcmask 1043456   ;;  %v947_v41 = vpack.c.bf16 %v2381_v14, %v2368_v2  ;;  %v1201_v22 = vpack.c.bf16 %v1196_v27, %v1195_v58  ;;  %v1766_v58 = vld [vmem:[%s3116_s4 + $0x10] sm:$0xf] }
  0x4d   : > { %1934 = vmatprep.mubr.msk.bf16.mxu0 %vm3244_vm8, %v1199_v52  ;;  %1893 = vmatpush3.bf16.msra.mxu1 %v738_v6  ;;  %vm3245_vm9 = vmmov %vm3242_vm3  ;;  %v711_v52 = vsel %vm2629_vm12, %v687_v33, 0.0  ;;  %vm3248_vm3 = vcmp.ge.s32.totalorder %v2339_v54, 1  ;;  %vm3252_vm12 = vcmp.ge.s32.totalorder %v2346_v57, 1  ;;  %v1547_v2 = vld [vmem:[%s269_s12 + $0x10] sm:$0xff] }
  0x4e   : > { %1888 = vmatprep.mubr.msk.bf16.mxu1 %vm3245_vm9, %v485_v42  ;;  %2047 = vmatprep.subr.msk.bf16.mxu1 %vm3246_vm11, %v1761_v39  ;;  %vm2784_vm14 = vmand %vm3248_vm3, %vm3247_vm15  ;;  %v486_v42 = vpack.c.bf16 %v482_v61, %v481_v40  ;;  %v2817_v40 = vld [vmem:[#allocation2 + $0x47] sm:$0xff]  ;;  %v719_v8 = vpack.c.bf16 %v712_v55, %v711_v52  ;;  %v1786_v61 = vld [vmem:[%s3116_s4 + $0x20] sm:$0xf]  ;;  %vm3261_vm3 = vcmp.ge.s32.totalorder %v2413_v29, 1 }
  0x4f   : > { %vm2795_vm13 = vmand %vm3252_vm12, %vm3251_vm10  ;;  %v713_v27 = vsel %vm2784_vm14, %v2378_v13, 0.0  ;;  %vm3273_vm14 = vcmp.lt.s32.totalorder %v2319_v32, 7 }
  0x50   : > { %vm2803_vm1 = vmand %vm3152_vm0, %vm2667_vm5  ;;  %vm3266_vm0 = vnez %v3178_v17  ;;  %v714_v52 = vsel %vm2795_vm13, %v2392_v21, 0.0  ;;  %v1318_v47 = vsel %vm3273_vm14, %v2390_v19, 0.0  ;;  %vm3274_vm13 = vcmask 1043456  }
  0x51   : > { %vm3257_vm8 = vmmov %vm3246_vm11  ;;  %vm3260_vm11 = vnez %v3174_v5  ;;  %v1197_v55 = vsel %vm2803_vm1, %v2817_v40, 0.0  ;;  %v720_v18 = vpack.c.bf16 %v714_v52, %v713_v27  ;;  %vm3275_vm1 = vnez %v3210_v53 }
  0x52   : > { %v1344_v31 = vsel %vm3257_vm8, %v2461_v46, 0  ;;  %vm2813_vm9 = vmand %vm3151_vm2, %vm2685_vm7  ;;  %vm3264_vm8 = vcmask 64512   ;;  %vm3267_vm7 = vcmp.ge.s32.totalorder %v2415_v30, 1  ;;  %v1550_v46 = vld [vmem:[%s269_s12 + $0x28] sm:$0xff] }
  0x53   : > { %vm2826_vm12 = vmand %vm3261_vm3, %vm3260_vm11  ;;  %1935 = vmatmul.mubr.msk.bf16.vlgmr.msra.gmra.mrb[0].mxu0 %vm3264_vm8, %v1200_v12  ;;  %v1198_v12 = vsel %vm2813_vm9, %v1174_v44, 0.0  ;;  %vm3276_vm9 = vcmp.ge.s32.totalorder %v2485_v3, 1  ;;  %v2924_v44 = vld [vmem:[#allocation2 + $0x48] sm:$0xff] }
  0x54   : > { %vm3265_vm2 = vmmov %vm3264_vm8  ;;  %1943 = vmatpush3.bf16.msra.mxu0 %v1344_v31  ;;  %v1202_v31 = vpack.c.bf16 %v1198_v12, %v1197_v55 }
  0x55   : > { %1889 = vmatmul.mubr.msk.bf16.gmra.mrb[4].mxu1 %vm3265_vm2, %v486_v42  ;;  %vm2836_vm5 = vmand %vm3267_vm7, %vm3266_vm0  ;;  %2052 = vmatprep.subr.msk.bf16.mxu0 %vm3274_vm13, %v1786_v61  ;;  %v715_v42 = vsel %vm2826_vm12, %v2421_v35, 0.0  ;;  %vm3280_vm12 = vnez %v3215_v20  ;;  %v1546_v20 = vld [vmem:[%s269_s12 + $0x8] sm:$0xff] }
  0x56   : > { %vm3270_vm3 = vmmov %vm3265_vm2 }
  0x57   : > { %1938 = vmatprep.mubr.msk.bf16.mxu0 %vm3270_vm3, %v1201_v22  ;;  %vm3271_vm7 = vmmov %vm3265_vm2  ;;  %vm3272_vm2 = vcmp.lt.s32.totalorder %v2315_v28, 7  ;;  %v716_v22 = vsel %vm2836_vm5, %v2509_v10, 0.0  ;;  %vm3284_vm5 = vcmask 64512  }
  0x58   : > { %1894 = vmatprep.mubr.msk.bf16.mxu1 %vm3271_vm7, %v719_v8  ;;  %v1317_v43 = vsel %vm3272_vm2, %v2381_v14, 0.0  ;;  %vm2870_vm8 = vmand %vm3276_vm9, %vm3275_vm1  ;;  %v721_v6 = vpack.c.bf16 %v716_v22, %v715_v42  ;;  %vm3281_vm7 = vcmp.ge.s32.totalorder %v2487_v9, 1  ;;  %vm3287_vm9 = vcmp.lt.s32.totalorder %v2346_v57, 7  ;;  %v1548_v14 = vld [vmem:[%s269_s12 + $0x18] sm:$0xff] }
  0x59   : > { %v1325_v33 = vpack.c.bf16 %v1318_v47, %v1317_v43  ;;  %vm3279_vm3 = vmmov %vm3274_vm13  ;;  %vm3286_vm13 = vcmp.lt.s32.totalorder %v2339_v54, 7  ;;  %v1320_v27 = vsel %vm3287_vm9, %v2425_v37, 0.0  ;;  %v717_v52 = vsel %vm2870_vm8, %v2556_v26, 0.0 }
  0x5a   : > { %v864_v8 = vsel %vm3279_vm3, %v1761_v39, 0  ;;  %vm2879_vm2 = vmand %vm3281_vm7, %vm3280_vm12  ;;  %v1319_v39 = vsel %vm3286_vm13, %v2423_v36, 0.0  ;;  %vm3292_vm13 = vcmask 1043456   ;;  %vm3293_vm9 = vnez %v3166_v50  ;;  %v1300_v50 = vld [vmem:[#allocation2 + $0x50] sm:$0xff] }
  0x5b   : > { %1939 = vmatmul.mubr.msk.bf16.gmra.mrb[4].mxu0 %vm3284_vm5, %v1202_v31  ;;  %vm3285_vm14 = vmmov %vm3284_vm5  ;;  %v718_v55 = vsel %vm2879_vm2, %v2689_v38, 0.0  ;;  %v837_v47 = vsel %vm3293_vm9, %v2506_v4, 0.0  ;;  %vm3294_vm8 = vnez %v3168_v59  ;;  %v1326_v22 = vpack.c.bf16 %v1320_v27, %v1319_v39 }
  0x5c   : > { %vm3288_vm3 = vmmov %vm3284_vm5  ;;  %vm3290_vm5 = vcmp.lt.s32.totalorder %v2413_v29, 7  ;;  %v838_v42 = vsel %vm3294_vm8, %v2600_v48, 0.0  ;;  %vm3295_vm2 = vnez %v3158_v60  ;;  %vm3303_vm8 = vcmask 64512  }
  0x5d   : > { %1895 = vmatmul.mubr.msk.bf16.vlgmr.msra.gmra.mrb[0].mxu1 %vm3285_vm14, %v720_v18  ;;  %1944 = vmatprep.mubr.msk.bf16.mxu0 %vm3288_vm3, %v1325_v33  ;;  %vm3289_vm7 = vmmov %vm3288_vm3  ;;  %v1321_v12 = vsel %vm3290_vm5, %v2516_v11, 0.0  ;;  %vm3291_vm14 = vcmp.lt.s32.totalorder %v2415_v30, 7  ;;  %vm3296_vm3 = vcmp.lt.s32.totalorder %v2315_v28, 7  ;;  %v845_v4 = vpack.c.bf16 %v838_v42, %v837_v47  ;;  %v1557_v28 = vld [vmem:[%s3117_s5] sm:$0x3] }
  0x5e   : > { %1903 = vmatpush3.bf16.msra.mxu1 %v864_v8  ;;  %1898 = vmatprep.mubr.msk.bf16.mxu1 %vm3289_vm7, %v721_v6  ;;  %v1322_v43 = vsel %vm3291_vm14, %v2558_v0, 0.0  ;;  %v722_v6 = vpack.c.bf16 %v718_v55, %v717_v52  ;;  %vm2919_vm7 = vmand %vm3296_vm3, %vm3295_vm2  ;;  %vm3300_vm14 = vcmp.lt.s32.totalorder %v2319_v32, 7  ;;  %vm3305_vm3 = vnez %v3176_v16 }
  0x5f   : > { %2048 = vmatprep.subr.msk.bf16.mxu1 %vm3292_vm13, %v1766_v58  ;;  %v1327_v18 = vpack.c.bf16 %v1322_v43, %v1321_v12  ;;  %vm3299_vm5 = vmmov %vm3292_vm13  ;;  %v839_v60 = vsel %vm3305_vm3, %v2602_v49, 0.0  ;;  %vm3309_vm9 = vcmp.lt.s32.totalorder %v2487_v9, 7  ;;  %vm3312_vm3 = vnez %v3187_v7 }
  0x60   : > { %v1470_v33 = vsel %vm3299_vm5, %v1786_v61, 0  ;;  %vm2930_vm13 = vmand %vm3300_vm14, %vm3238_vm4  ;;  %vm3306_vm5 = vnez %v3180_v25  ;;  %vm3308_vm14 = vcmp.lt.s32.totalorder %v2485_v3, 7  ;;  %v1324_v48 = vsel %vm3309_vm9, %v1300_v50, 0.0 }
  0x61   : > { %vm3304_vm2 = vmmov %vm3303_vm8  ;;  %v840_v32 = vsel %vm3306_vm5, %v2653_v56, 0.0  ;;  %v1323_v62 = vsel %vm3308_vm14, %v2924_v44, 0.0  ;;  %v1443_v61 = vsel %vm2919_vm7, %v2378_v13, 0.0  ;;  %v1444_v16 = vsel %vm2930_vm13, %v2392_v21, 0.0 }
  0x62   : > { %vm3307_vm4 = vmmov %vm3304_vm2  ;;  %v841_v25 = vsel %vm3312_vm3, %v2655_v15, 0.0  ;;  %v842_v49 = vsel %vm2588_vm6, %v2718_v1, 0.0  ;;  %vm3313_vm7 = vcmp.lt.s32.totalorder %v2339_v54, 7  ;;  %v1328_v21 = vpack.c.bf16 %v1324_v48, %v1323_v62 }
  0x63   : > { %1945 = vmatmul.mubr.msk.bf16.vlgmr.msra.gmra.mrb[0].mxu0 %vm3303_vm8, %v1326_v22  ;;  %vm3310_vm8 = vmmov %vm3304_vm2  ;;  %v846_v56 = vpack.c.bf16 %v840_v32, %v839_v60  ;;  %vm3316_vm13 = vcmp.lt.s32.totalorder %v2346_v57, 7  ;;  %v1451_v45 = vpack.c.bf16 %v1444_v16, %v1443_v61  ;;  %vm3319_vm6 = vcmask 1043456  }
  0x64   : > { %1953 = vmatpush3.bf16.msra.mxu0 %v1470_v33  ;;  %1948 = vmatprep.mubr.msk.bf16.mxu0 %vm3307_vm4, %v1327_v18  ;;  %vm2969_vm9 = vmand %vm3313_vm7, %vm3247_vm15  ;;  %v966_v15 = vsel %vm3319_vm6, %v1766_v58, 0  ;;  %v847_v23 = vpack.c.bf16 %v842_v49, %v841_v25  ;;  %vm3320_vm15 = vcmp.lt.s32.totalorder %v2413_v29, 7  ;;  %vm3326_vm3 = vnez %v3217_v63 }
  0x65   : > { %1899 = vmatmul.mubr.msk.bf16.gmra.mrb[4].mxu1 %vm3304_vm2, %v722_v6  ;;  %vm3311_vm2 = vcmask 1041408   ;;  %vm2977_vm5 = vmand %vm3316_vm13, %vm3251_vm10  ;;  %vm3323_vm10 = vcmp.lt.s32.totalorder %v2415_v30, 7  ;;  %v1445_v57 = vsel %vm2969_vm9, %v2421_v35, 0.0  ;;  %v843_v29 = vsel %vm3326_vm3, %v2720_v51, 0.0 }
  0x66   : > { %1904 = vmatprep.mubr.msk.bf16.mxu1 %vm3310_vm8, %v845_v4  ;;  %2053 = vmatprep.subr.msk.bf16.mxu0 %vm3311_vm2, %v1557_v28  ;;  %vm2986_vm4 = vmand %vm3320_vm15, %vm3260_vm11  ;;  %v1446_v24 = vsel %vm2977_vm5, %v2509_v10, 0.0  ;;  %vm3329_vm9 = vcmp.lt.s32.totalorder %v2485_v3, 7  ;;  %vm3330_vm5 = vcmask 1041408   ;;  %vm3331_vm6 = vcmp.lt.s32.totalorder %v2487_v9, 7  ;;  %v3335_v3 = vld [vmem:[#allocation6_spill] sm:$0xff] }
  0x67   : > { %vm448_vm14 = vmand %vm3323_vm10, %vm3266_vm0  ;;  %vm3327_vm0 = vnez %v3223_v34  ;;  %v1447_v35 = vsel %vm2986_vm4, %v2556_v26, 0.0  ;;  %v1452_v10 = vpack.c.bf16 %v1446_v24, %v1445_v57  ;;  %v1573_v63 = vsel %vm3330_vm5, %v1557_v28, 0  ;;  %v1426_v34 = vld [vmem:[#allocation2 + $0x51] sm:$0xff]  ;;  %v1545_v9 = vld [vmem:[%s269_s12] sm:$0xff] }
  0x68   : > { %vm3324_vm2 = vmmov %vm3310_vm8  ;;  %v844_v30 = vsel %vm3327_vm0, %v2817_v40, 0.0  ;;  %v1448_v5 = vsel %vm448_vm14, %v2689_v38, 0.0  ;;  %v1553_v51 = vpack.c.bf16 %v1546_v20, %v1545_v9  ;;  %v949_v40 = vpack.c.bf16 %v2516_v11, %v2425_v37 }
  0x69   : > { %vm3325_vm11 = vmmov %vm3324_vm2  ;;  %v848_v17 = vpack.c.bf16 %v844_v30, %v843_v29  ;;  %v1453_v1 = vpack.c.bf16 %v1448_v5, %v1447_v35  ;;  %v3338_v8 = vpack.c.bf16 %v2423_v36, %v2390_v19  ;;  %v1554_v58 = vpack.c.bf16 %v1548_v14, %v1547_v2  ;;  %v1551_v19 = vld [vmem:[%s269_s12 + $0x30] sm:$0xff]  ;;  %v1552_v36 = vld [vmem:[%s269_s12 + $0x38] sm:$0xff] }
  0x6a   : > { %vm3328_vm7 = vmmov %vm3324_vm2  ;;  %v950_v37 = vpack.c.bf16 %v2924_v44, %v2558_v0  ;;  %v1556_v39 = vpack.c.bf16 %v1552_v36, %v1551_v19 }
  0x6b   : > { %1949 = vmatmul.mubr.msk.bf16.gmra.mrb[4].mxu0 %vm3310_vm8, %v1328_v21  ;;  %vm449_vm13 = vmand %vm3329_vm9, %vm3275_vm1 }
  0x6c   : > { %1954 = vmatprep.mubr.msk.bf16.mxu0 %vm3325_vm11, %v1451_v45  ;;  %vm450_vm15 = vmand %vm3331_vm6, %vm3280_vm12  ;;  %v1449_v26 = vsel %vm449_vm13, %v3335_v3, 0.0  ;;  %vm1558_vm12 = vcmask 31744  }
  0x6d   : > { %1905 = vmatmul.mubr.msk.bf16.vlgmr.msra.gmra.mrb[0].mxu1 %vm3324_vm2, %v846_v56  ;;  %vm3332_vm4 = vmmov %vm3324_vm2  ;;  %v1450_v53 = vsel %vm450_vm15, %v1426_v34, 0.0 }
  0x6e   : > { %1913 = vmatpush3.bf16.msra.mxu1 %v966_v15  ;;  %1908 = vmatprep.mubr.msk.bf16.mxu1 %vm3328_vm7, %v847_v23  ;;  %vm3333_vm10 = vmmov %vm3324_vm2  ;;  %v1454_v38 = vpack.c.bf16 %v1450_v53, %v1449_v26 }
  0x6f   : > { %vm3334_vm14 = vmmov %vm3324_vm2 }
  0x70   : > { %vm3336_vm1 = vmmov %vm3324_vm2 }
  0x71   : > { %vm3337_vm8 = vmmov %vm3336_vm1 }
  0x72   : > { %vm3339_vm2 = vmmov %vm3336_vm1 }
  0x73   : > { %1955 = vmatmul.mubr.msk.bf16.vlgmr.msra.gmra.mrb[0].mxu0 %vm3332_vm4, %v1452_v10  ;;  %vm3340_vm11 = vmmov %vm3336_vm1 }
  0x74   : > { %1963 = vmatpush3.bf16.msra.mxu0 %v1573_v63  ;;  %1958 = vmatprep.mubr.msk.bf16.mxu0 %vm3334_vm14, %v1453_v1  ;;  %vm3341_vm3 = vmmov %vm3336_vm1 }
  0x75   : > { %1909 = vmatmul.mubr.msk.bf16.gmra.mrb[4].mxu1 %vm3333_vm10, %v848_v17  ;;  %vm3342_vm0 = vmmov %vm3336_vm1 }
  0x76   : > { %1914 = vmatprep.mubr.msk.bf16.mxu1 %vm3336_vm1, %v947_v41  ;;  %v1549_v41 = vld [vmem:[%s269_s12 + $0x20] sm:$0xff]  ;;  %vm3343_vm7 = vmmov %vm3342_vm0 }
  0x77   : > { %v1555_v11 = vpack.c.bf16 %v1550_v46, %v1549_v41  ;;  %vm3344_vm9 = vmmov %vm3342_vm0 }
  0x78   : > { %vm3345_vm13 = vmmov %vm3342_vm0 }
  0x79   : > { %vm3346_vm5 = vmmov %vm3342_vm0 }
  0x7a   : > { %vm3347_vm6 = vmmov %vm3342_vm0 }
  0x7b   : > { %1959 = vmatmul.mubr.msk.bf16.gmra.mrb[4].mxu0 %vm3337_vm8, %v1454_v38  ;;  %vm3348_vm15 = vmmov %vm3342_vm0 }
  0x7c   : > { %1964 = vmatprep.mubr.msk.bf16.mxu0 %vm1558_vm12, %v1553_v51  ;;  %vm3349_vm4 = vmmov %vm3342_vm0 }
  0x7d   : > { %1915 = vmatmul.mubr.msk.bf16.vlgmr.msra.gmra.mrb[0].mxu1 %vm3339_vm2, %v3338_v8 }
  0x7e   : > { %1918 = vmatprep.mubr.msk.bf16.mxu1 %vm3340_vm11, %v949_v40 }
  0x83   : > { %1965 = vmatmul.mubr.msk.bf16.vlgmr.msra.gmra.mrb[0].mxu0 %vm1558_vm12, %v1554_v58 }
  0x84   : > { %1968 = vmatprep.mubr.msk.bf16.mxu0 %vm1558_vm12, %v1555_v11 }
  0x85   : > { %1919 = vmatmul.mubr.msk.bf16.gmra.mrb[4].mxu1 %vm3341_vm3, %v950_v37 }
  0x8b   : > { %1969 = vmatmul.mubr.msk.bf16.gmra.mrb[4].mxu0 %vm1558_vm12, %v1556_v39 }
 0x150   : > { %v1916_v27 = vpop.f32.mrb[0].mxu1 }
 0x151   : > { %v1002_v52 = vpop.f32.mrb[1].mxu1 }
 0x152   : > { %v1917_v55 = vpop.f32.mrb[2].mxu1 }
 0x153   : > { %v1005_v12 = vpop.f32.mrb[3].mxu1 }
 0x156   : > { %v1966_v0 = vpop.f32.mrb[0].mxu0 }
 0x157   : > { %v1972_v47 = vadd.f32 %v1966_v0, %v1916_v27  ;;  %v1609_v42 = vpop.f32.mrb[1].mxu0 }
 0x158   : > { %v1920_v43 = vpop.f32.mrb[4].mxu1  ;;  %v1973_v6 = vadd.f32 %v1609_v42, %v1002_v52  ;;  %v1967_v18 = vpop.f32.mrb[2].mxu0 }
 0x159   : > { %v1018_v22 = vpop.f32.mrb[5].mxu1  ;;  %1642 = vst.msk [vmem:[%s259_s15 + $0x10] sm:$0xff] %vm3342_vm0, %v1972_v47  ;;  %v1974_v33 = vadd.f32 %v1967_v18, %v1917_v55  ;;  %v1612_v44 = vpop.f32.mrb[3].mxu0 }
 0x15a   : > { %v1921_v31 = vpop.f32.mrb[6].mxu1  ;;  %1640 = vst.msk [vmem:[%s259_s15] sm:$0xff] %vm3343_vm7, %v1973_v6  ;;  %v1975_v4 = vadd.f32 %v1612_v44, %v1005_v12 }
 0x15b   : > { %v1021_v50 = vpop.f32.mrb[7].mxu1  ;;  %1643 = vst.msk [vmem:[%s259_s15 + $0x18] sm:$0xff] %vm3344_vm9, %v1974_v33 }
 0x15c   : > { %1641 = vst.msk [vmem:[%s259_s15 + $0x8] sm:$0xff] %vm3345_vm13, %v1975_v4 }
 0x15e   : > { %v1970_v59 = vpop.f32.mrb[4].mxu0 }
 0x15f   : > { %v1976_v28 = vadd.f32 %v1970_v59, %v1920_v43  ;;  %v1625_v60 = vpop.f32.mrb[5].mxu0 }
 0x160   : > { %v1977_v32 = vadd.f32 %v1625_v60, %v1018_v22  ;;  %v1971_v62 = vpop.f32.mrb[6].mxu0 }
 0x161   : > { %1646 = vst.msk [vmem:[%s259_s15 + $0x30] sm:$0xff] %vm3346_vm5, %v1976_v28  ;;  %v1978_v48 = vadd.f32 %v1971_v62, %v1921_v31  ;;  %v1628_v61 = vpop.f32.mrb[7].mxu0 }
 0x162   : > { %1644 = vst.msk [vmem:[%s259_s15 + $0x20] sm:$0xff] %vm3347_vm6, %v1977_v32  ;;  %v1979_v16 = vadd.f32 %v1628_v61, %v1021_v50 }
 0x163   : > { %1647 = vst.msk [vmem:[%s259_s15 + $0x38] sm:$0xff] %vm3348_vm15, %v1978_v48 }
 0x164   : > { %1645 = vst.msk [vmem:[%s259_s15 + $0x28] sm:$0xff] %vm3349_vm4, %v1979_v16 }
 0x165   : > { %2109 = shalt.err (!%p2106_p3)
}
 0x166   : > { %s2110_s10 = scalar_lea.hbm %s3062_s20, 1024  ;;  %s2114_s13 = scalar_lea.hbm %s3118_s6, 2048 }
 0x167   : > { %p2111_p4 = scmp.ne.s32.totalorder %s3062_s20, %s2110_s10  ;;  %p2115_p9 = scmp.lt.u32.totalorder %s3062_s20, %s3118_s6 }
 0x168   : > { %p2116_p10 = scmp.lt.u32.totalorder %s2114_s13, %s2110_s10  ;;  %p2118_p12 = scmp.lt.u32.totalorder %s2110_s10, %s3062_s20 }
 0x169   : > { %p2112_p7 = pnand %p2111_p4, %p2237_p5 }
 0x16a   : > { %p2117_p11 = por %p2116_p10, %p2115_p9 }
 0x16b   : > { %p2113_p8 = pneg %p2112_p7 }
 0x16c   : > { %p2119_p13 = por %p2118_p12, %p2117_p11 }
 0x16e   : > { %p2120_p0 = pnand %p2119_p13, %p2113_p8 }
 0x170   : > { %2123 = shalt.err (!%p2120_p0)
}
 0x171   : > { %s2162_s16 = smov 128   ;;  %s2163_s18 = smov 8  }
 0x172   : > { %2054 = dma.vmem_to_hbm [thread:$0]  (%p2237_p5), %s3064_s17, 1024, %s3062_s20, %s3071_s25, %s2162_s16, %s2162_s16, %s2163_s18  }
 0x173 PF: > { %p2060_p1 = scmp.ge.s32.totalorder %s2158_s24, 2  ;;  %s1677_s19 = sand.u32 1, %s2146_s21  }
 0x174   : > { %s1678_s26 = scalar_lea.sflag [#allocation4], %s1677_s19 }
 0x175   : > { %p2057_p2 = pnand %p2060_p1, %p2241_p6 }
 0x177   : > { %2141 = dma.done.wait (!%p2057_p2), %s1678_s26, 1024  }
 0x178   : > { %2143 = vsyncadd (!%p2057_p2), %s1678_s26, 4294966272  ;;  %p16_p3 = scmp.ge.s32.totalorder %s2224_s27, 4   ;;  %s3350_s21 = smov %s2150_s22 }
 0x179   : > { %s3351_s22 = smov %s2154_s23  ;;  %s3352_s23 = smov %s2235_s30 }
 0x17a   : > { %s3353_s24 = smov %s2224_s27  ;;  %18 = sbr.rel (!%p16_p3) target bundleno = 3 (0x3), region = 90 }
 0x181   :  { %1683 = vsyncpa [#allocation4], 1 }
 0x182   :  { %1685 = vsyncpa [#allocation4 + $0x1], 1 }

// kernel: _forward_impl.2
= control target key start
LH: loop header
LB: loop body
LE: loop exit
PB: predicated region body
PF: predicated region fallthrough
CT: control target
= control target key end

     0   :  { %s2035_s21 = smov 0   ;;  %s2864_s0 = inlined_call_operand.vmem [shape: f32[2,8,8,4], index: 0, kind: input, shape index: {}]   ;;  %s2865_s1 = inlined_call_operand.vmem [shape: f32[1,4], index: 1, kind: input, shape index: {}]   ;;  %s2866_s2 = inlined_call_operand.vmem [shape: f32[1,4], index: 2, kind: input, shape index: {}]   ;;  %s2867_s3 = inlined_call_operand.vmem [shape: bf16[9,4,8], index: 3, kind: input, shape index: {}]   ;;  %s2868_s4 = inlined_call_operand.vmem [shape: bf16[2,8,8,8], index: 4, kind: output, shape index: {0}]   ;;  %s2869_s5 = inlined_call_operand.vmem [shape: f32[2,1,8], index: 5, kind: output, shape index: {1}]   ;;  %s2870_s6 = inlined_call_operand.vmem [shape: f32[2,1,8], index: 6, kind: output, shape index: {2}]  }
   0x1 LB: > { %s1712_s22 = sadd.s32 4294967295, %s1997_s21   ;;  %p1716_p0 = scmp.ge.s32.totalorder %s1997_s21, 1  ;;  %s1997_s21 = sphi %s2035_s21, %s17_s21  }
   0x2   : > { %p217_p1 = scmp.lt.s32.totalorder %s1997_s21, 3 }
   0x4   : > { %p218_p2 = pnand %p1716_p0, %p217_p1 }
   0x6   : > { %221 = sbr.rel (%p218_p2) target bundleno = 355 (0x163), region = 36 }
   0xd   : > { %v1723_v0 = vld [vmem:[%s2867_s3 + $0x2] sm:$0x3]  ;;  %vm2878_vm0 = vcmask 1041408   ;;  %v2049_v1 = vld [vmem:[%s2867_s3 + $0x8] sm:$0x3]  ;;  %p253_p3 = scmp.lt.s32.totalorder %s1712_s22, 1  ;;  %v345_v2 = vlaneseq }
   0xe   : > { %1972 = vmatprep.subr.msk.bf16.mxu1 %vm2878_vm0, %v1723_v0  ;;  %1976 = vmatprep.subr.msk.bf16.mxu0 %vm2878_vm0, %v2049_v1  ;;  %v531_v3 = vsel %vm2878_vm0, %v1723_v0, 0  ;;  %v2057_v4 = vsel %vm2878_vm0, %v2049_v1, 0  ;;  %vm2876_vm1 = vcmask 31744   ;;  %v1999_v5 = vmov 0.0   ;;  %v2071_v7 = vld [vmem:[%s2867_s3] sm:$0x3] }
   0xf   : > { %2907 = vst [vmem:[#allocation3_spill] sm:$0xff] %v2057_v4  ;;  %1817 = vmatpush3.bf16.msra.mxu1 %v531_v3  ;;  %1857 = vmatpush3.bf16.msra.mxu0 %v2057_v4  ;;  %s3087_s22 = smov (!%p253_p3, %s1712_s22), 1  ;;  %271 = vst.msk [vmem:[#allocation2] sm:$0xff] %vm2876_vm1, %v1999_v5  ;;  %v2064_v6 = vshrl.u32 %v345_v2, 7  ;;  %v2078_v8 = vld [vmem:[%s2867_s3 + $0xa] sm:$0x3] }
  0x10   : > { %272 = vst.msk [vmem:[#allocation2 + $0x8] sm:$0xff] %vm2876_vm1, %v1999_v5  ;;  %273 = vst.msk [vmem:[#allocation2 + $0x50] sm:$0xff] %vm2876_vm1, %v1999_v5  ;;  %1973 = vmatprep.subr.msk.bf16.mxu1 %vm2878_vm0, %v2071_v7  ;;  %s1769_s7 = sshll.u32 %s3087_s22, 6  ;;  %v2084_v9 = vld [vmem:[%s2865_s1] ss:$0 sm:$0xff]  ;;  %1978 = vmatprep.subr.msk.bf16.mxu0 %vm2878_vm0, %v2078_v8  ;;  %s1770_s27 = sshll.u32 %s3087_s22, 5 }
  0x11   : > { %274 = vst.msk [vmem:[#allocation2 + $0x58] sm:$0xff] %vm2876_vm1, %v1999_v5  ;;  %s2091_s12 = scalar_lea.vmem %s2864_s0, %s1769_s7  ;;  %v2094_v10 = vadd.s32 8, %v2064_v6  ;;  %v2101_v13 = vld [vmem:[%s2866_s2] ss:$0 sm:$0xff]  ;;  %v362_v14 = vshra.s32 %v2064_v6, 3  ;;  %v2108_v18 = vadd.s32 16, %v2064_v6  ;;  %s2819_s30 = scalar_lea.vmem %s2868_s4, %s1770_s27 }
  0x12   : > { %v275_v11 = vld [vmem:[%s2091_s12] sm:$0xff]  ;;  %v276_v12 = vld [vmem:[%s2091_s12 + $0x8] sm:$0xff]  ;;  %v277_v17 = vld [vmem:[%s2091_s12 + $0x10] sm:$0xff]  ;;  %v2120_v27 = vadd.s32 24, %v2064_v6  ;;  %v2123_v28 = vadd.s32 32, %v2064_v6  ;;  %v2126_v29 = vadd.s32 40, %v2064_v6  ;;  %s265_s9 = scalar_lea.vmem %s2869_s5, %s3087_s22 }
  0x13   : > { %v290_v15 = vmul.f32 %v2084_v9, %v275_v11  ;;  %v291_v16 = vmul.f32 %v2084_v9, %v276_v12  ;;  %v363_v21 = vshra.s32 %v2094_v10, 3  ;;  %v278_v22 = vld [vmem:[%s2091_s12 + $0x18] sm:$0xff]  ;;  %v292_v23 = vmul.f32 %v2084_v9, %v277_v17  ;;  %v279_v24 = vld [vmem:[%s2091_s12 + $0x20] sm:$0xff]  ;;  %v280_v25 = vld [vmem:[%s2091_s12 + $0x28] sm:$0xff] }
  0x14   : > { %v2117_v26 = vand.u32 7, %v362_v14  ;;  %v293_v32 = vmul.f32 %v2084_v9, %v278_v22  ;;  %v294_v34 = vmul.f32 %v2084_v9, %v279_v24  ;;  %v295_v35 = vmul.f32 %v2084_v9, %v280_v25  ;;  %v281_v55 = vld [vmem:[%s2091_s12 + $0x30] sm:$0xff] }
  0x15   : > { %v305_v19 = vadd.f32 %v2101_v13, %v290_v15  ;;  %v306_v20 = vadd.f32 %v2101_v13, %v291_v16  ;;  %v307_v33 = vadd.f32 %v2101_v13, %v292_v23  ;;  %v2132_v38 = vand.u32 7, %v363_v21  ;;  %v1752_v23 = vld [vmem:[%s2867_s3 + $0xc] sm:$0x3] }
  0x16   : > { %v364_v39 = vshra.s32 %v2108_v18, 3  ;;  %v308_v40 = vadd.f32 %v2101_v13, %v293_v32  ;;  %v309_v42 = vadd.f32 %v2101_v13, %v294_v34  ;;  %vm2871_vm5 = vcmp.ge.s32.totalorder %v2117_v26, 1 }
  0x17   : > { %vm313_vm2 = vcmp.ge.f32.partialorder %v305_v19, 0.0  ;;  %vm314_vm3 = vcmp.ge.f32.partialorder %v306_v20, 0.0  ;;  %v321_v30 = vmul.f32 0.1, %v305_v19  ;;  %v322_v31 = vmul.f32 0.1, %v306_v20 }
  0x18   : > { %vm315_vm4 = vcmp.ge.f32.partialorder %v307_v33, 0.0  ;;  %v323_v41 = vmul.f32 0.1, %v307_v33  ;;  %v310_v43 = vadd.f32 %v2101_v13, %v295_v35  ;;  %v365_v44 = vshra.s32 %v2120_v27, 3  ;;  %v479_v48 = vld [vmem:[#allocation2 + $0x8] sm:$0xff] }
  0x19   : > { %v329_v36 = vsel %vm313_vm2, %v305_v19, %v321_v30  ;;  %v330_v37 = vsel %vm314_vm3, %v306_v20, %v322_v31  ;;  %v2142_v45 = vand.u32 7, %v364_v39  ;;  %vm316_vm6 = vcmp.ge.f32.partialorder %v308_v40, 0.0 }
  0x1a   : > { %337 = vst.msk [vmem:[#allocation2 + $0x10] sm:$0xff] %vm2876_vm1, %v329_v36  ;;  %338 = vst.msk [vmem:[#allocation2 + $0x18] sm:$0xff] %vm2876_vm1, %v330_v37  ;;  %v324_v46 = vmul.f32 0.1, %v308_v40  ;;  %v331_v47 = vsel %vm315_vm4, %v307_v33, %v323_v41  ;;  %vm317_vm7 = vcmp.ge.f32.partialorder %v309_v42, 0.0  ;;  %vm318_vm8 = vcmp.ge.f32.partialorder %v310_v43, 0.0 }
  0x1b   : > { %339 = vst.msk [vmem:[#allocation2 + $0x20] sm:$0xff] %vm2876_vm1, %v331_v47  ;;  %v325_v49 = vmul.f32 0.1, %v309_v42  ;;  %v326_v50 = vmul.f32 0.1, %v310_v43  ;;  %v2145_v52 = vand.u32 7, %v365_v44  ;;  %v296_v63 = vmul.f32 %v2084_v9, %v281_v55 }
  0x1c   : > { %v332_v51 = vsel %vm316_vm6, %v308_v40, %v324_v46  ;;  %vm2872_vm9 = vcmp.ge.s32.totalorder %v2132_v38, 1  ;;  %v503_v56 = vsel %vm2871_vm5, %v479_v48, 0.0  ;;  %vm2877_vm10 = vcmp.ge.s32.totalorder %v2142_v45, 1  ;;  %v442_v55 = vld [vmem:[#allocation2 + $0x7] sm:$0xff] }
  0x1d   : > { %340 = vst.msk [vmem:[#allocation2 + $0x28] sm:$0xff] %vm2876_vm1, %v332_v51  ;;  %v333_v53 = vsel %vm317_vm7, %v309_v42, %v325_v49  ;;  %v334_v54 = vsel %vm318_vm8, %v310_v43, %v326_v50  ;;  %v366_v57 = vshra.s32 %v2123_v28, 3  ;;  %v367_v58 = vshra.s32 %v2126_v29, 3 }
  0x1e   : > { %341 = vst.msk [vmem:[#allocation2 + $0x30] sm:$0xff] %vm2876_vm1, %v333_v53  ;;  %342 = vst.msk [vmem:[#allocation2 + $0x38] sm:$0xff] %vm2876_vm1, %v334_v54  ;;  %vm2875_vm11 = vcmp.ge.s32.totalorder %v2145_v52, 1  ;;  %v354_v5 = vand.u32 7, %v2064_v6  ;;  %v355_v11 = vand.u32 7, %v2094_v10  ;;  %v2177_v15 = vadd.s32 48, %v2064_v6 }
  0x1f   : > { %v2167_v3 = vand.u32 7, %v366_v57  ;;  %v2174_v14 = vand.u32 7, %v367_v58  ;;  %v356_v16 = vand.u32 7, %v2108_v18  ;;  %v611_v19 = vsel %vm2878_vm0, %v2071_v7, 0  ;;  %v282_v53 = vld [vmem:[%s2091_s12 + $0x38] sm:$0xff]  ;;  %s268_s12 = scalar_lea.vmem %s2870_s6, %s3087_s22 }
  0x20   : > { %v311_v21 = vadd.f32 %v2101_v13, %v296_v63  ;;  %v2192_v22 = vadd.s32 56, %v2064_v6  ;;  %v357_v7 = vand.u32 7, %v2120_v27  ;;  %v1083_v25 = vsel %vm2878_vm0, %v2078_v8, 0  ;;  %v2208_v6 = vld [vmem:[%s2867_s3 + $0x4] sm:$0x3] }
  0x21   : > { %v930_v59 = vld [vmem:[#allocation2 + $0x10] sm:$0xff]  ;;  %v2157_v60 = vld [vmem:[#allocation2 + $0x18] sm:$0xff]  ;;  %vm2874_vm12 = vcmp.ge.s32.totalorder %v2167_v3, 1  ;;  %vm2873_vm13 = vcmp.ge.s32.totalorder %v2174_v14, 1  ;;  %vm2210_vm14 = vcmp.lt.s32.totalorder %v354_v5, 7  ;;  %v2908_v31 = vmov 0 }
  0x22   : > { %v938_v61 = vpack.c.bf16 %v2157_v60, %v930_v59  ;;  %v504_v62 = vsel %vm2872_vm9, %v930_v59, 0.0  ;;  %v505_v2 = vsel %vm2877_vm10, %v2157_v60, 0.0  ;;  %v2172_v12 = vld [vmem:[#allocation2 + $0x20] sm:$0xff]  ;;  %v2909_v31 = vsel %vm2210_vm14, 4294967295, %v2908_v31  ;;  %v2218_v27 = vld [vmem:[#allocation2 + $0x11] sm:$0xff]  ;;  %v678_v4 = vld [vmem:[#allocation2 + $0x9] sm:$0xff] }
  0x23   : > { %v511_v0 = vpack.c.bf16 %v504_v62, %v503_v56  ;;  %v506_v17 = vsel %vm2875_vm11, %v2172_v12, 0.0  ;;  %vm2214_vm15 = vcmp.lt.s32.totalorder %v355_v11, 7  ;;  %v2910_v32 = vmov 0  ;;  %v2221_v8 = vld [vmem:[#allocation2 + $0x19] sm:$0xff]  ;;  %v2286_v58 = vld [vmem:[#allocation2 + $0xf] sm:$0xff] }
  0x24   : > { %1858 = vmatprep.mubr.msk.bf16.mxu0 %vm2876_vm1, %v938_v61  ;;  %v2187_v10 = vld [vmem:[#allocation2 + $0x28] sm:$0xff]  ;;  %v512_v20 = vpack.c.bf16 %v506_v17, %v505_v2  ;;  %v2911_v32 = vsel %vm2214_vm15, 4294967295, %v2910_v32  ;;  %v368_v34 = vshra.s32 %v2177_v15, 3  ;;  %vm2226_vm2 = vcmp.ge.s32.totalorder %v354_v5, 1  ;;  %v2394_v54 = vld [vmem:[#allocation2 + $0x1f] sm:$0xff] }
  0x25   : > { %1818 = vmatprep.mubr.msk.bf16.mxu1 %vm2876_vm1, %v511_v0  ;;  %v939_v24 = vpack.c.bf16 %v2187_v10, %v2172_v12  ;;  %v507_v30 = vsel %vm2874_vm12, %v2187_v10, 0.0  ;;  %v2223_v33 = vld [vmem:[#allocation2 + $0x30] sm:$0xff]  ;;  %v2912_v35 = vmov 0  ;;  %vm2233_vm3 = vcmp.lt.s32.totalorder %v356_v16, 7  ;;  %v2240_v39 = vld [vmem:[#allocation2 + $0x21] sm:$0xff]  ;;  %vm2270_vm8 = vmand %vm2871_vm5, %vm2226_vm2 }
  0x26   : > { %1819 = vmatmul.mubr.msk.bf16.vlgmr.msra.gmra.mrb[0].mxu1 %vm2876_vm1, %v512_v20  ;;  %v2913_v35 = vsel %vm2226_vm2, 4294967295, %v2912_v35  ;;  %v2914_v36 = vmov 0  ;;  %v508_v37 = vsel %vm2873_vm13, %v2223_v33, 0.0  ;;  %vm319_vm4 = vcmp.ge.f32.partialorder %v311_v21, 0.0  ;;  %v2253_v46 = vld [vmem:[#allocation2 + $0x29] sm:$0xff]  ;;  %v2301_v5 = vld [vmem:[#allocation2 + $0x31] sm:$0xff] }
  0x27   : > { %1859 = vmatmul.mubr.msk.bf16.vlgmr.msra.gmra.mrb[0].mxu0 %vm2876_vm1, %v939_v24  ;;  %v2915_v36 = vsel %vm2233_vm3, 4294967295, %v2914_v36  ;;  %1827 = vmatpush3.bf16.msra.mxu1 %v611_v19  ;;  %v513_v40 = vpack.c.bf16 %v508_v37, %v507_v30  ;;  %v327_v41 = vmul.f32 0.1, %v311_v21  ;;  %v369_v42 = vshra.s32 %v2192_v22, 3  ;;  %v2333_v18 = vld [vmem:[%s2867_s3 + $0xe] sm:$0x3] }
  0x28   : > { %1867 = vmatpush3.bf16.msra.mxu0 %v1083_v25  ;;  %1974 = vmatprep.subr.msk.bf16.mxu1 %vm2878_vm0, %v2208_v6  ;;  %vm2245_vm6 = vcmp.ge.s32.totalorder %v355_v11, 1  ;;  %v2916_v43 = vmov 0  ;;  %vm2249_vm7 = vcmp.lt.s32.totalorder %v357_v7, 7  ;;  %v2918_v44 = vmov 0  ;;  %v2304_v11 = vld [vmem:[#allocation2 + $0x38] sm:$0xff] }
  0x29   : > { %v2917_v43 = vsel %vm2245_vm6, 4294967295, %v2916_v43  ;;  %v2919_v44 = vsel %vm2249_vm7, 4294967295, %v2918_v44  ;;  %v1056_v47 = vsel %vm2210_vm14, %v2218_v27, 0.0  ;;  %v1057_v48 = vsel %vm2214_vm15, %v2221_v8, 0.0  ;;  %1979 = vmatprep.subr.msk.bf16.mxu0 %vm2878_vm0, %v1752_v23  ;;  %1822 = vmatprep.mubr.msk.bf16.mxu1 %vm2876_vm1, %v513_v40 }
  0x2a   : > { %v335_v49 = vsel %vm319_vm4, %v311_v21, %v327_v41  ;;  %v2263_v50 = vand.u32 7, %v368_v34  ;;  %v1064_v51 = vpack.c.bf16 %v1057_v48, %v1056_v47  ;;  %v1058_v56 = vsel %vm2233_vm3, %v2240_v39, 0.0  ;;  %vm2282_vm4 = vmand %vm2872_vm9, %vm2245_vm6 }
  0x2b   : > { %343 = vst.msk [vmem:[#allocation2 + $0x40] sm:$0xff] %vm2876_vm1, %v335_v49  ;;  %v2288_v59 = vand.u32 7, %v369_v42  ;;  %v1059_v61 = vsel %vm2249_vm7, %v2253_v46, 0.0  ;;  %v358_v62 = vand.u32 7, %v2123_v28  ;;  %v359_v63 = vand.u32 7, %v2126_v29 }
  0x2c   : > { %1868 = vmatprep.mubr.msk.bf16.mxu0 %vm2876_vm1, %v1064_v51  ;;  %vm2880_vm5 = vcmp.lt.s32.totalorder %v2117_v26, 7  ;;  %v297_v0 = vmul.f32 %v2084_v9, %v282_v53  ;;  %vm2886_vm9 = vcmp.lt.s32.totalorder %v2132_v38, 7  ;;  %v466_v2 = vsel %vm2270_vm8, %v442_v55, 0.0  ;;  %v2392_v53 = vld [vmem:[#allocation2 + $0x17] sm:$0xff] }
  0x2d   : > { %vm2879_vm13 = vcmp.ge.s32.totalorder %v2263_v50, 1  ;;  %vm2306_vm12 = vcmp.lt.s32.totalorder %v358_v62, 7  ;;  %v2924_v17 = vmov 0  ;;  %v467_v28 = vsel %vm2282_vm4, %v2286_v58, 0.0  ;;  %vm2361_vm1 = vmand %vm2886_vm9, %vm2245_vm6 }
  0x2e   : > { %v2925_v17 = vsel %vm2306_vm12, 4294967295, %v2924_v17  ;;  %vm2315_vm11 = vcmp.ge.s32.totalorder %v356_v16, 1  ;;  %v2926_v9 = vmov 0  ;;  %v1065_v29 = vpack.c.bf16 %v1059_v61, %v1058_v56 }
  0x2f   : > { %v2927_v9 = vsel %vm2315_vm11, 4294967295, %v2926_v9  ;;  %v312_v19 = vadd.f32 %v2101_v13, %v297_v0  ;;  %vm2320_vm8 = vcmp.ge.s32.totalorder %v357_v7, 1  ;;  %v2928_v20 = vmov 0  ;;  %v2412_v0 = vld [vmem:[#allocation2 + $0x2f] sm:$0xff] }
  0x30   : > { %v2929_v20 = vsel %vm2320_vm8, 4294967295, %v2928_v20  ;;  %v1209_v21 = vsel %vm2878_vm0, %v1752_v23, 0  ;;  %vm2326_vm10 = vcmp.lt.s32.totalorder %v359_v63, 7  ;;  %v2931_v24 = vmov 0  ;;  %vm2345_vm0 = vmand %vm2880_vm5, %vm2226_vm2 }
  0x31   : > { %2930 = vst [vmem:[#allocation4_spill] sm:$0xff] %v2929_v20  ;;  %v2932_v24 = vsel %vm2326_vm10, 4294967295, %v2931_v24  ;;  %v509_v13 = vsel %vm2879_vm13, %v2304_v11, 0.0  ;;  %v1060_v16 = vsel %vm2306_vm12, %v2301_v5, 0.0  ;;  %vm320_vm4 = vcmp.ge.f32.partialorder %v312_v19, 0.0 }
  0x32   : > { %v328_v7 = vmul.f32 0.1, %v312_v19  ;;  %v2349_v25 = vld [vmem:[#allocation2 + $0x40] sm:$0xff]  ;;  %v474_v30 = vpack.c.bf16 %v467_v28, %v466_v2  ;;  %vm2353_vm13 = vcmp.ge.s32.totalorder %v358_v62, 1  ;;  %v2935_v37 = vmov 0 }
  0x33   : > { %v2351_v34 = vld [vmem:[#allocation2 + $0x39] sm:$0xff]  ;;  %v2936_v37 = vsel %vm2353_vm13, 4294967295, %v2935_v37  ;;  %vm2939_vm5 = vcmp.ge.s32.totalorder %v2142_v45, 1  ;;  %vm2942_vm12 = vcmp.ge.s32.totalorder %v2288_v59, 1  ;;  %vm2943_vm7 = vcmask 31744  }
  0x34   : > { %vm2369_vm2 = vmand %vm2939_vm5, %vm2315_vm11  ;;  %v510_v42 = vsel %vm2942_vm12, %v2349_v25, 0.0  ;;  %1869 = vmatmul.mubr.msk.bf16.vlgmr.msra.gmra.mrb[0].mxu0 %vm2943_vm7, %v1065_v29  ;;  %v1061_v47 = vsel %vm2326_vm10, %v2351_v34, 0.0  ;;  %v336_v48 = vsel %vm320_vm4, %v312_v19, %v328_v7  ;;  %vm2380_vm9 = vcmp.ge.s32.totalorder %v359_v63, 1  ;;  %v2410_v63 = vld [vmem:[#allocation2 + $0x27] sm:$0xff] }
  0x35   : > { %vm2946_vm5 = vcmp.ge.s32.totalorder %v2145_v52, 1  ;;  %v514_v55 = vpack.c.bf16 %v510_v42, %v509_v13  ;;  %1877 = vmatpush3.bf16.msra.mxu0 %v1209_v21  ;;  %v1066_v56 = vpack.c.bf16 %v1061_v47, %v1060_v16  ;;  %vm2949_vm12 = vmmov %vm2943_vm7  ;;  %v360_v57 = vand.u32 7, %v2177_v15  ;;  %v2522_v15 = vld [vmem:[#allocation2 + $0x37] sm:$0xff] }
  0x36   : > { %vm2388_vm6 = vmand %vm2946_vm5, %vm2320_vm8  ;;  %344 = vst.msk [vmem:[#allocation2 + $0x48] sm:$0xff] %vm2949_vm12, %v336_v48  ;;  %v361_v61 = vand.u32 7, %v2192_v22  ;;  %vm2950_vm7 = vcmp.ge.s32.totalorder %v2167_v3, 1  ;;  %vm2953_vm5 = vcmask 1041408   ;;  %v468_v2 = vsel %vm2369_vm2, %v2392_v53, 0.0 }
  0x37   : > { %vm2403_vm4 = vmand %vm2950_vm7, %vm2353_vm13  ;;  %1980 = vmatprep.subr.msk.bf16.mxu0 %vm2953_vm5, %v2333_v18  ;;  %1823 = vmatmul.mubr.msk.bf16.gmra.mrb[4].mxu1 %vm2949_vm12, %v514_v55  ;;  %vm2955_vm7 = vcmp.ge.s32.totalorder %v2174_v14, 1  ;;  %vm2958_vm5 = vcmp.ge.s32.totalorder %v2117_v26, 1  ;;  %v469_v28 = vsel %vm2388_vm6, %v2394_v54, 0.0  ;;  %v2964_v19 = vmov 0 }
  0x38   : > { %vm2954_vm3 = vmmov %vm2949_vm12  ;;  %vm2452_vm12 = vcmp.lt.s32.totalorder %v361_v61, 7  ;;  %v2966_v21 = vmov 0  ;;  %vm2456_vm2 = vcmp.ge.s32.totalorder %v360_v57, 1  ;;  %v2968_v13 = vmov 0 }
  0x39   : > { %1872 = vmatprep.mubr.msk.bf16.mxu0 %vm2954_vm3, %v1066_v56  ;;  %vm2420_vm13 = vmand %vm2955_vm7, %vm2380_vm9  ;;  %1828 = vmatprep.mubr.msk.bf16.mxu1 %vm2954_vm3, %v474_v30  ;;  %vm2961_vm7 = vcmp.ge.s32.totalorder %v2132_v38, 1  ;;  %v2967_v21 = vsel %vm2452_vm12, 4294967295, %v2966_v21  ;;  %v2969_v13 = vsel %vm2456_vm2, 4294967295, %v2968_v13  ;;  %v1182_v16 = vsel %vm2345_vm0, %v2392_v53, 0.0 }
  0x3a   : > { %vm2428_vm10 = vmand %vm2958_vm5, %vm2210_vm14  ;;  %vm2448_vm14 = vcmp.lt.s32.totalorder %v360_v57, 7  ;;  %vm2970_vm6 = vcmp.lt.s32.totalorder %v2142_v45, 7  ;;  %v470_v30 = vsel %vm2403_vm4, %v2410_v63, 0.0  ;;  %v471_v41 = vsel %vm2420_vm13, %v2412_v0, 0.0 }
  0x3b   : > { %vm2444_vm5 = vmand %vm2961_vm7, %vm2214_vm15  ;;  %v2965_v19 = vsel %vm2448_vm14, 4294967295, %v2964_v19  ;;  %vm2477_vm7 = vcmp.ge.s32.totalorder %v361_v61, 1  ;;  %v1183_v23 = vsel %vm2361_vm1, %v2394_v54, 0.0  ;;  %vm2975_vm0 = vcmp.lt.s32.totalorder %v2145_v52, 7 }
  0x3c   : > { %vm2467_vm3 = vmand %vm2970_vm6, %vm2315_vm11  ;;  %v475_v48 = vpack.c.bf16 %v469_v28, %v468_v2  ;;  %vm2978_vm13 = vcmask 1041408   ;;  %vm2979_vm1 = vcmp.ge.s32.totalorder %v2263_v50, 1  ;;  %v476_v61 = vpack.c.bf16 %v471_v41, %v470_v30  ;;  %v2524_v2 = vld [vmem:[#allocation2 + $0x3f] sm:$0xff] }
  0x3d   : > { %vm2488_vm6 = vmand %vm2975_vm0, %vm2320_vm8  ;;  %v729_v51 = vsel %vm2978_vm13, %v2208_v6, 0  ;;  %v2495_v55 = vld [vmem:[#allocation2 + $0x41] sm:$0xff]  ;;  %v2497_v56 = vld [vmem:[#allocation2 + $0x49] sm:$0xff]  ;;  %vm2982_vm13 = vcmp.ge.s32.totalorder %v2288_v59, 1  ;;  %v1190_v28 = vpack.c.bf16 %v1183_v23, %v1182_v16  ;;  %vm2986_vm0 = vcmp.lt.s32.totalorder %v2167_v3, 7 }
  0x3e   : > { %vm2503_vm11 = vmand %vm2979_vm1, %vm2456_vm2  ;;  %v1062_v57 = vsel %vm2448_vm14, %v2495_v55, 0.0  ;;  %v1063_v6 = vsel %vm2452_vm12, %v2497_v56, 0.0  ;;  %vm2985_vm1 = vnez %v2936_v37  ;;  %vm2989_vm15 = vcmask 31744   ;;  %v1737_v41 = vld [vmem:[%s2867_s3 + $0x6] sm:$0x3] }
  0x3f   : > { %vm2518_vm4 = vmand %vm2982_vm13, %vm2477_vm7  ;;  %v1067_v20 = vpack.c.bf16 %v1063_v6, %v1062_v57  ;;  %1829 = vmatmul.mubr.msk.bf16.vlgmr.msra.gmra.mrb[0].mxu1 %vm2989_vm15, %v475_v48  ;;  %vm2990_vm13 = vcmp.lt.s32.totalorder %v2174_v14, 7  ;;  %v472_v23 = vsel %vm2503_vm11, %v2522_v15, 0.0  ;;  %v702_v57 = vsel %vm2428_vm10, %v678_v4, 0.0 }
  0x40   : > { %vm2530_vm8 = vmand %vm2986_vm0, %vm2985_vm1  ;;  %1837 = vmatpush3.bf16.msra.mxu1 %v729_v51  ;;  %v473_v48 = vsel %vm2518_vm4, %v2524_v2, 0.0  ;;  %v703_v6 = vsel %vm2444_vm5, %v2218_v27, 0.0  ;;  %v1184_v51 = vsel %vm2467_vm3, %v2410_v63, 0.0  ;;  %vm2997_vm10 = vcmp.ge.s32.totalorder %v2142_v45, 1 }
  0x41   : > { %vm2542_vm12 = vmand %vm2990_vm13, %vm2380_vm9  ;;  %vm3000_vm5 = vcmask 1041408   ;;  %v1186_v27 = vsel %vm2530_vm8, %v2522_v15, 0.0  ;;  %vm2904_vm3 = vcmp.lt.s32.totalorder %v2263_v50, 7  ;;  %vm3002_vm0 = vcmp.ge.s32.totalorder %v2145_v52, 1 }
  0x42   : > { %vm2993_vm14 = vmmov %vm2989_vm15  ;;  %vm2996_vm15 = vnez %v2915_v36  ;;  %1975 = vmatprep.subr.msk.bf16.mxu1 %vm3000_vm5, %v1737_v41  ;;  %v1187_v22 = vsel %vm2542_vm12, %v2524_v2, 0.0  ;;  %v477_v7 = vpack.c.bf16 %v473_v48, %v472_v23  ;;  %v710_v40 = vpack.c.bf16 %v703_v6, %v702_v57  ;;  %v2617_v23 = vld [vmem:[#allocation2 + $0x47] sm:$0xff]  ;;  %v1165_v48 = vld [vmem:[#allocation2 + $0x4f] sm:$0xff] }
  0x43   : > { %1873 = vmatmul.mubr.msk.bf16.gmra.mrb[4].mxu0 %vm2993_vm14, %v1067_v20  ;;  %v1185_v20 = vsel %vm2488_vm6, %v2412_v0, 0.0  ;;  %vm2994_vm11 = vmmov %vm2993_vm14  ;;  %vm3001_vm6 = vnez %v2919_v44  ;;  %vm3005_vm8 = vnez %v2925_v17  ;;  %v1192_v62 = vpack.c.bf16 %v1187_v22, %v1186_v27 }
  0x44   : > { %1832 = vmatprep.mubr.msk.bf16.mxu1 %vm2994_vm11, %v476_v61  ;;  %vm2995_vm14 = vmmov %vm2994_vm11  ;;  %vm2906_vm11 = vcmp.lt.s32.totalorder %v2288_v59, 7  ;;  %v1191_v47 = vpack.c.bf16 %v1185_v20, %v1184_v51  ;;  %v1335_v30 = vsel %vm3000_vm5, %v2333_v18, 0  ;;  %v1762_v18 = vld [vmem:[%s2867_s3 + $0x10] sm:$0x3] }
  0x45   : > { %1878 = vmatprep.mubr.msk.bf16.mxu0 %vm2995_vm14, %v1190_v28  ;;  %vm2570_vm4 = vmand %vm2997_vm10, %vm2996_vm15  ;;  %vm3006_vm14 = vcmp.ge.s32.totalorder %v2167_v3, 1 }
  0x46   : > { %vm2586_vm13 = vmand %vm3002_vm0, %vm3001_vm6  ;;  %v704_v6 = vsel %vm2570_vm4, %v2221_v8, 0.0  ;;  %vm3021_vm4 = vcmp.lt.s32.totalorder %v2117_v26, 7 }
  0x47   : > { %vm2595_vm12 = vmand %vm3006_vm14, %vm3005_vm8  ;;  %vm3013_vm14 = vcmask 31744   ;;  %v705_v51 = vsel %vm2586_vm13, %v2240_v39, 0.0  ;;  %v1308_v29 = vsel %vm3021_vm4, %v2157_v60, 0.0  ;;  %vm3022_vm13 = vcmp.lt.s32.totalorder %v2132_v38, 7 }
  0x48   : > { %vm2603_vm10 = vmand %vm2904_vm3, %vm2456_vm2  ;;  %1833 = vmatmul.mubr.msk.bf16.gmra.mrb[4].mxu1 %vm3013_vm14, %v477_v7  ;;  %vm3014_vm3 = vnez %v2932_v24  ;;  %vm3015_vm2 = vcmp.ge.s32.totalorder %v2174_v14, 1  ;;  %v706_v4 = vsel %vm2595_vm12, %v2253_v46, 0.0  ;;  %v1309_v7 = vsel %vm3022_vm13, %v2172_v12, 0.0 }
  0x49   : > { %vm2613_vm0 = vmand %vm2906_vm11, %vm2477_vm7  ;;  %v1188_v20 = vsel %vm2603_vm10, %v2617_v23, 0.0  ;;  %vm3023_vm10 = vcmask 1041408   ;;  %vm3025_vm12 = vcmp.ge.s32.totalorder %v2263_v50, 1  ;;  %v1316_v12 = vpack.c.bf16 %v1309_v7, %v1308_v29 }
  0x4a   : > { %vm2624_vm8 = vmand %vm3015_vm2, %vm3014_vm3  ;;  %v1189_v27 = vsel %vm2613_vm0, %v1165_v48, 0.0  ;;  %vm3024_vm0 = vnez %v2965_v19  ;;  %vm3033_vm13 = vcmask 31744  }
  0x4b   : > { %vm3018_vm5 = vmmov %vm3013_vm14  ;;  %v707_v22 = vsel %vm2624_vm8, %v2301_v5, 0.0 }
  0x4c   : > { %1879 = vmatmul.mubr.msk.bf16.vlgmr.msra.gmra.mrb[0].mxu0 %vm3018_vm5, %v1191_v47  ;;  %vm3019_vm14 = vmmov %vm3018_vm5  ;;  %v711_v47 = vpack.c.bf16 %v705_v51, %v704_v6  ;;  %v712_v28 = vpack.c.bf16 %v707_v22, %v706_v4  ;;  %v1290_v22 = vld [vmem:[#allocation2 + $0x48] sm:$0xff] }
  0x4d   : > { %1838 = vmatprep.mubr.msk.bf16.mxu1 %vm3019_vm14, %v710_v40  ;;  %1887 = vmatpush3.bf16.msra.mxu0 %v1335_v30  ;;  %vm3020_vm2 = vmmov %vm3018_vm5  ;;  %v1193_v40 = vpack.c.bf16 %v1189_v27, %v1188_v20  ;;  %vm3029_vm14 = vnez %v2967_v21 }
  0x4e   : > { %1882 = vmatprep.mubr.msk.bf16.mxu0 %vm3020_vm2, %v1192_v62  ;;  %1981 = vmatprep.subr.msk.bf16.mxu0 %vm3023_vm10, %v1762_v18  ;;  %vm2662_vm5 = vmand %vm3025_vm12, %vm3024_vm0  ;;  %vm3030_vm2 = vcmp.ge.s32.totalorder %v2288_v59, 1  ;;  %vm3035_vm12 = vcmp.lt.s32.totalorder %v2142_v45, 7 }
  0x4f   : > { %vm3028_vm8 = vmmov %vm3023_vm10  ;;  %v708_v30 = vsel %vm2662_vm5, %v2351_v34, 0.0  ;;  %v1310_v16 = vsel %vm3035_vm12, %v2187_v10, 0.0  ;;  %vm3040_vm5 = vnez %v2917_v43  ;;  %vm3042_vm12 = vcmp.lt.s32.totalorder %v2167_v3, 7  ;;  %v1291_v43 = vld [vmem:[#allocation2 + $0x50] sm:$0xff] }
  0x50   : > { %v855_v62 = vsel %vm3028_vm8, %v1737_v41, 0  ;;  %vm2671_vm4 = vmand %vm3030_vm2, %vm3029_vm14  ;;  %1839 = vmatmul.mubr.msk.bf16.vlgmr.msra.gmra.mrb[0].mxu1 %vm3033_vm13, %v711_v47  ;;  %vm3036_vm8 = vcmp.lt.s32.totalorder %v2145_v52, 7  ;;  %v829_v6 = vsel %vm3040_vm5, %v2392_v53, 0.0  ;;  %v1312_v10 = vsel %vm3042_vm12, %v2304_v11, 0.0 }
  0x51   : > { %1847 = vmatpush3.bf16.msra.mxu1 %v855_v62  ;;  %vm3034_vm10 = vmmov %vm3033_vm13  ;;  %v709_v41 = vsel %vm2671_vm4, %v2495_v55, 0.0  ;;  %v1311_v48 = vsel %vm3036_vm8, %v2223_v33, 0.0  ;;  %vm3041_vm4 = vcmask 1041408   ;;  %vm3043_vm8 = vcmp.lt.s32.totalorder %v2174_v14, 7 }
  0x52   : > { %vm3037_vm2 = vmmov %vm3034_vm10  ;;  %1977 = vmatprep.subr.msk.bf16.mxu1 %vm3041_vm4, %v2049_v1  ;;  %v1313_v51 = vsel %vm3043_vm8, %v2349_v25, 0.0  ;;  %v713_v20 = vpack.c.bf16 %v709_v41, %v708_v30  ;;  %v1317_v27 = vpack.c.bf16 %v1311_v48, %v1310_v16  ;;  %vm3050_vm12 = vnez %v2911_v32 }
  0x53   : > { %1842 = vmatprep.mubr.msk.bf16.mxu1 %vm3037_vm2, %v712_v28  ;;  %vm3038_vm13 = vmmov %vm3037_vm2  ;;  %vm3051_vm8 = vcmp.lt.s32.totalorder %v2132_v38, 7 }
  0x54   : > { %1883 = vmatmul.mubr.msk.bf16.gmra.mrb[4].mxu0 %vm3034_vm10, %v1193_v40  ;;  %vm3039_vm10 = vnez %v2913_v35  ;;  %v1318_v35 = vpack.c.bf16 %v1313_v51, %v1312_v10  ;;  %vm3044_vm2 = vmmov %vm3041_vm4  ;;  %vm3049_vm4 = vcmask 31744  }
  0x55   : > { %1888 = vmatprep.mubr.msk.bf16.mxu0 %vm3038_vm13, %v1316_v12  ;;  %v828_v57 = vsel %vm3039_vm10, %v2286_v58, 0.0  ;;  %v1461_v58 = vsel %vm3044_vm2, %v1762_v18, 0  ;;  %vm3045_vm13 = vnez %v2909_v31  ;;  %vm3046_vm10 = vcmp.lt.s32.totalorder %v2117_v26, 7  ;;  %vm2719_vm11 = vmand %vm3051_vm8, %vm3050_vm12  ;;  %v3055_v26 = vld [vmem:[#allocation4_spill] sm:$0xff] }
  0x56   : > { %v836_v4 = vpack.c.bf16 %v829_v6, %v828_v57  ;;  %vm2710_vm5 = vmand %vm3046_vm10, %vm3045_vm13  ;;  %vm3054_vm2 = vnez %v2927_v9  ;;  %vm3056_vm13 = vnez %v3055_v26  ;;  %vm3059_vm12 = vcmp.lt.s32.totalorder %v2263_v50, 7 }
  0x57   : > { %v830_v31 = vsel %vm3054_vm2, %v2394_v54, 0.0  ;;  %v831_v18 = vsel %vm3056_vm13, %v2410_v63, 0.0  ;;  %vm3057_vm10 = vmmov %vm3049_vm4  ;;  %v1314_v38 = vsel %vm3059_vm12, %v1290_v22, 0.0  ;;  %vm3060_vm8 = vcmp.lt.s32.totalorder %v2288_v59, 7 }
  0x58   : > { %1843 = vmatmul.mubr.msk.bf16.gmra.mrb[4].mxu1 %vm3049_vm4, %v713_v20  ;;  %vm3058_vm14 = vmmov %vm3049_vm4  ;;  %v1315_v32 = vsel %vm3060_vm8, %v1291_v43, 0.0  ;;  %v832_v9 = vsel %vm2985_vm1, %v2412_v0, 0.0  ;;  %v833_v54 = vsel %vm2380_vm9, %v2522_v15, 0.0  ;;  %v1434_v63 = vsel %vm2710_vm5, %v2221_v8, 0.0 }
  0x59   : > { %1848 = vmatprep.mubr.msk.bf16.mxu1 %vm3058_vm14, %v836_v4  ;;  %v1435_v29 = vsel %vm2719_vm11, %v2240_v39, 0.0  ;;  %v837_v7 = vpack.c.bf16 %v831_v18, %v830_v31  ;;  %vm3061_vm14 = vcmp.lt.s32.totalorder %v2142_v45, 7  ;;  %v1319_v0 = vpack.c.bf16 %v1315_v32, %v1314_v38 }
  0x5a   : > { %vm2752_vm2 = vmand %vm3061_vm14, %vm2996_vm15  ;;  %vm3064_vm9 = vcmp.lt.s32.totalorder %v2145_v52, 7  ;;  %v838_v49 = vpack.c.bf16 %v833_v54, %v832_v9  ;;  %v1442_v39 = vpack.c.bf16 %v1435_v29, %v1434_v63  ;;  %vm3067_vm11 = vnez %v2925_v17  ;;  %v3073_v52 = vld [vmem:[#allocation3_spill] sm:$0xff] }
  0x5b   : > { %vm2760_vm1 = vmand %vm3064_vm9, %vm3001_vm6  ;;  %vm3068_vm5 = vcmp.lt.s32.totalorder %v2167_v3, 7  ;;  %vm3074_vm12 = vnez %v2969_v13  ;;  %v835_v3 = vsel %vm2477_vm7, %v2617_v23, 0.0  ;;  %v1436_v44 = vsel %vm2752_vm2, %v2253_v46, 0.0 }
  0x5c   : > { %1889 = vmatmul.mubr.msk.bf16.vlgmr.msra.gmra.mrb[0].mxu0 %vm3057_vm10, %v1317_v27  ;;  %vm2768_vm13 = vmand %vm3068_vm5, %vm3067_vm11  ;;  %vm3072_vm10 = vcmp.lt.s32.totalorder %v2174_v14, 7  ;;  %v834_v36 = vsel %vm3074_vm12, %v2524_v2, 0.0  ;;  %v1437_v14 = vsel %vm2760_vm1, %v2301_v5, 0.0  ;;  %v940_v15 = vpack.c.bf16 %v2304_v11, %v2223_v33  ;;  %v1417_v5 = vld [vmem:[#allocation2 + $0x51] sm:$0xff] }
  0x5d   : > { %1897 = vmatpush3.bf16.msra.mxu0 %v1461_v58  ;;  %1892 = vmatprep.mubr.msk.bf16.mxu0 %vm3049_vm4, %v1318_v35  ;;  %vm3071_vm15 = vmmov %vm3049_vm4  ;;  %v1438_v17 = vsel %vm2768_vm13, %v2351_v34, 0.0  ;;  %v839_v13 = vpack.c.bf16 %v835_v3, %v834_v36  ;;  %v1443_v42 = vpack.c.bf16 %v1437_v14, %v1436_v44  ;;  %vm3077_vm7 = vcmp.lt.s32.totalorder %v2263_v50, 7 }
  0x5e   : > { %vm439_vm6 = vmand %vm3072_vm10, %vm3014_vm3  ;;  %vm3078_vm2 = vnez %v2967_v21  ;;  %vm3079_vm9 = vcmp.lt.s32.totalorder %v2288_v59, 7  ;;  %v941_v34 = vpack.c.bf16 %v1290_v22, %v2349_v25  ;;  %vm1558_vm12 = vcmask 57344  }
  0x5f   : > { %vm3075_vm3 = vmmov %vm3049_vm4  ;;  %v1439_v24 = vsel %vm439_vm6, %v2495_v55, 0.0  ;;  %vm1598_vm6 = vcmask 60416  }
  0x60   : > { %1849 = vmatmul.mubr.msk.bf16.vlgmr.msra.gmra.mrb[0].mxu1 %vm3071_vm15, %v837_v7  ;;  %vm3076_vm8 = vmmov %vm3075_vm3  ;;  %v1444_v46 = vpack.c.bf16 %v1439_v24, %v1438_v17 }
  0x61   : > { %1907 = vmatpush3.bf16.msra.mxu1 %v3073_v52  ;;  %1852 = vmatprep.mubr.msk.bf16.mxu1 %vm3075_vm3, %v838_v49  ;;  %vm440_vm14 = vmand %vm3077_vm7, %vm3024_vm0 }
  0x62   : > { %vm441_vm1 = vmand %vm3079_vm9, %vm3078_vm2  ;;  %v1440_v33 = vsel %vm440_vm14, %v2497_v56, 0.0 }
  0x63   : > { %vm3080_vm11 = vmmov %vm3075_vm3  ;;  %v1441_v11 = vsel %vm441_vm1, %v1417_v5, 0.0 }
  0x64   : > { %1893 = vmatmul.mubr.msk.bf16.gmra.mrb[4].mxu0 %vm3049_vm4, %v1319_v0  ;;  %vm3081_vm5 = vmmov %vm3075_vm3  ;;  %v1445_v50 = vpack.c.bf16 %v1441_v11, %v1440_v33  ;;  %vm1536_vm4 = vcmask 64512  }
  0x65   : > { %1898 = vmatprep.mubr.msk.bf16.mxu0 %vm3076_vm8, %v1442_v39  ;;  %vm3082_vm13 = vmmov %vm3075_vm3 }
  0x66   : > { %vm3083_vm15 = vmmov %vm3075_vm3 }
  0x67   : > { %vm3084_vm0 = vmmov %vm3075_vm3 }
  0x68   : > { %1853 = vmatmul.mubr.msk.bf16.gmra.mrb[4].mxu1 %vm3080_vm11, %v839_v13  ;;  %vm3085_vm10 = vmmov %vm3084_vm0 }
  0x69   : > { %1862 = vmatprep.mubr.msk.bf16.mxu1 %vm3082_vm13, %v940_v15 }
  0x6c   : > { %1899 = vmatmul.mubr.msk.bf16.vlgmr.msra.gmra.mrb[0].mxu0 %vm3081_vm5, %v1443_v42 }
  0x6d   : > { %1902 = vmatprep.mubr.msk.bf16.mxu0 %vm3083_vm15, %v1444_v46 }
  0x74   : > { %1903 = vmatmul.mubr.msk.bf16.gmra.mrb[4].mxu0 %vm3084_vm0, %v1445_v50  ;;  %1863 = vmatmul.mubr.msk.bf16.vlgmr.msra.gmra.mrb[4].mxu1 %vm3085_vm10, %v941_v34 }
 0x133   : > { %v1850_v59 = vpop.f32.mrb[0].mxu1 }
 0x134   : > { %v891_v19 = vpop.f32.mrb[1].mxu1 }
 0x135   : > { %v1851_v21 = vpop.f32.mrb[2].mxu1 }
 0x136   : > { %v894_v55 = vpop.f32.mrb[3].mxu1 }
 0x13f   : > { %v1900_v2 = vpop.f32.mrb[0].mxu0 }
 0x140   : > { %v1908_v23 = vadd.f32 %v1900_v2, %v1850_v59  ;;  %v1497_v47 = vpop.f32.mrb[1].mxu0 }
 0x141   : > { %v1909_v25 = vadd.f32 %v1497_v47, %v891_v19  ;;  %v1901_v56 = vpop.f32.mrb[2].mxu0 }
 0x142   : > { %v1592_v40 = vpack.c.bf16 %v1908_v23, %v1908_v23  ;;  %v1910_v61 = vadd.f32 %v1901_v56, %v1851_v21  ;;  %v1500_v62 = vpop.f32.mrb[3].mxu0  ;;  %v1562_v30 = vmul.f32 %v1908_v23, %v1908_v23  ;;  %v1540_v51 = vsel %vm1536_vm4, %v1908_v23, 0.0 }
 0x143   : > { %v1560_v28 = vmul.f32 %v1909_v25, %v1909_v25  ;;  %v1590_v60 = vpack.c.bf16 %v1909_v25, %v1909_v25  ;;  %v1911_v12 = vadd.f32 %v1500_v62, %v894_v55  ;;  %v1537_v16 = vsel %vm1536_vm4, %v1909_v25, 0.0 }
 0x144   : > { %1601 = vst.msk [vmem:[%s2819_s30 + $0x8] sm:$0xf] %vm1598_vm6, %v1592_v40  ;;  %v1593_v41 = vpack.c.bf16 %v1910_v61, %v1910_v61  ;;  %v1563_v27 = vmul.f32 %v1910_v61, %v1910_v61  ;;  %v1571_v1 = vsel %vm1536_vm4, %v1562_v30, 0.0  ;;  %v1542_v53 = vsel %vm1536_vm4, %v1910_v61, 0.0 }
 0x145   : > { %1599 = vst.msk [vmem:[%s2819_s30] sm:$0xf] %vm1598_vm6, %v1590_v60  ;;  %v1538_v48 = vsel %vm1536_vm4, %v1911_v12, 0.0  ;;  %v1561_v57 = vmul.f32 %v1911_v12, %v1911_v12  ;;  %v1591_v6 = vpack.c.bf16 %v1911_v12, %v1911_v12  ;;  %v1568_v20 = vsel %vm1536_vm4, %v1560_v28, 0.0 }
 0x146   : > { %1602 = vst.msk [vmem:[%s2819_s30 + $0xc] sm:$0xf] %vm1598_vm6, %v1593_v41  ;;  %v1539_v10 = vadd.f32 %v1538_v48, %v1537_v16  ;;  %v1573_v9 = vsel %vm1536_vm4, %v1563_v27, 0.0 }
 0x147   : > { %v1569_v4 = vsel %vm1536_vm4, %v1561_v57, 0.0  ;;  %1600 = vst.msk [vmem:[%s2819_s30 + $0x4] sm:$0xf] %vm1598_vm6, %v1591_v6  ;;  %v1904_v35 = vpop.f32.mrb[4].mxu0  ;;  %v1864_v18 = vpop.f32.mrb[4].mxu1 }
 0x148   : > { %v1541_v58 = vadd.f32 %v1540_v51, %v1539_v10  ;;  %v1570_v22 = vadd.f32 %v1569_v4, %v1568_v20  ;;  %v1513_v43 = vpop.f32.mrb[5].mxu0  ;;  %v1912_v54 = vadd.f32 %v1904_v35, %v1864_v18  ;;  %v1009_v63 = vpop.f32.mrb[5].mxu1 }
 0x149   : > { %v1905_v31 = vpop.f32.mrb[6].mxu0  ;;  %v1913_v29 = vadd.f32 %v1513_v43, %v1009_v63  ;;  %v1865_v37 = vpop.f32.mrb[6].mxu1 }
 0x14a   : > { %v1572_v26 = vadd.f32 %v1571_v1, %v1570_v22  ;;  %v1543_v38 = vadd.f32 %v1542_v53, %v1541_v58  ;;  %v1516_v32 = vpop.f32.mrb[7].mxu0  ;;  %v1596_v0 = vpack.c.bf16 %v1912_v54, %v1912_v54  ;;  %v1914_v8 = vadd.f32 %v1905_v31, %v1865_v37  ;;  %v1012_v49 = vpop.f32.mrb[7].mxu1 }
 0x14b   : > { %v1544_v39 = vsel %vm1536_vm4, %v1913_v29, 0.0  ;;  %v1564_v45 = vmul.f32 %v1913_v29, %v1913_v29  ;;  %v1594_v52 = vpack.c.bf16 %v1913_v29, %v1913_v29  ;;  %v1915_v36 = vadd.f32 %v1516_v32, %v1012_v49 }
 0x14c   : > { %v1574_v7 = vadd.f32 %v1573_v9, %v1572_v26  ;;  %v1566_v3 = vmul.f32 %v1912_v54, %v1912_v54  ;;  %1605 = vst.msk [vmem:[%s2819_s30 + $0x18] sm:$0xf] %vm1598_vm6, %v1596_v0  ;;  %v1545_v44 = vadd.f32 %v1544_v39, %v1543_v38  ;;  %v1597_v17 = vpack.c.bf16 %v1914_v8, %v1914_v8 }
 0x14d   : > { %v1575_v14 = vsel %vm1536_vm4, %v1564_v45, 0.0  ;;  %1603 = vst.msk [vmem:[%s2819_s30 + $0x10] sm:$0xf] %vm1598_vm6, %v1594_v52  ;;  %v1546_v24 = vsel %vm1536_vm4, %v1915_v36, 0.0  ;;  %v1565_v13 = vmul.f32 %v1915_v36, %v1915_v36  ;;  %v1595_v46 = vpack.c.bf16 %v1915_v36, %v1915_v36 }
 0x14e   : > { %v1576_v42 = vadd.f32 %v1575_v14, %v1574_v7  ;;  %v1547_v15 = vadd.f32 %v1546_v24, %v1545_v44  ;;  %v1548_v5 = vsel %vm1536_vm4, %v1912_v54, 0.0  ;;  %v1567_v33 = vmul.f32 %v1914_v8, %v1914_v8  ;;  %1606 = vst.msk [vmem:[%s2819_s30 + $0x1c] sm:$0xf] %vm1598_vm6, %v1597_v17 }
 0x14f   : > { %v1577_v11 = vsel %vm1536_vm4, %v1565_v13, 0.0  ;;  %1604 = vst.msk [vmem:[%s2819_s30 + $0x14] sm:$0xf] %vm1598_vm6, %v1595_v46  ;;  %v1579_v59 = vsel %vm1536_vm4, %v1566_v3, 0.0  ;;  %v1550_v19 = vsel %vm1536_vm4, %v1914_v8, 0.0 }
 0x150   : > { %v1549_v50 = vadd.f32 %v1548_v5, %v1547_v15  ;;  %v1578_v34 = vadd.f32 %v1577_v11, %v1576_v42  ;;  %v1581_v2 = vsel %vm1536_vm4, %v1567_v33, 0.0 }
 0x152   : > { %v1551_v21 = vadd.f32 %v1550_v19, %v1549_v50  ;;  %v1580_v55 = vadd.f32 %v1579_v59, %v1578_v34 }
 0x154   : > { %v1552_v23 = vrot.slane %v1551_v21, 4  ;;  %v1582_v47 = vadd.f32 %v1581_v2, %v1580_v55 }
 0x156   : > { %v1553_v25 = vadd.f32 %v1552_v23, %v1551_v21  ;;  %v1583_v56 = vrot.slane %v1582_v47, 4 }
 0x158   : > { %v1554_v40 = vrot.slane %v1553_v25, 2  ;;  %v1584_v61 = vadd.f32 %v1583_v56, %v1582_v47 }
 0x15a   : > { %v1555_v62 = vadd.f32 %v1554_v40, %v1553_v25  ;;  %v1585_v28 = vrot.slane %v1584_v61, 2 }
 0x15c   : > { %v1556_v60 = vrot.slane %v1555_v62, 1  ;;  %v1586_v12 = vadd.f32 %v1585_v28, %v1584_v61 }
 0x15e   : > { %v1557_v30 = vadd.f32 %v1556_v60, %v1555_v62  ;;  %v1587_v41 = vrot.slane %v1586_v12, 1 }
 0x160   : > { %1559 = vst.msk [vmem:[%s265_s9] sm:$0x1] %vm1558_vm12, %v1557_v30  ;;  %v1588_v16 = vadd.f32 %v1587_v41, %v1586_v12 }
 0x162   : > { %1589 = vst.msk [vmem:[%s268_s12] sm:$0x1] %vm1558_vm12, %v1588_v16 }
 0x163 PF: > { %s17_s21 = sadd.s32 1, %s1997_s21  }
 0x164   : > { %p14_p4 = scmp.ge.s32.totalorder %s17_s21, 4  }
 0x166   :  { %16 = sbr.rel (!%p14_p4) target bundleno = 1 (0x1), region = 98 }

</bundles_post_ra>
